<compile_context>
chip_gen: v7x
topology: tpu7x:2x2x1
jax: 0.10.0
libtpu: 0.0.40
codegen_flags: <defaults>
</compile_context>

<pallas_src>
import jax
import jax.numpy as jnp
from jax import lax
from jax.experimental import pallas as pl
from jax.experimental.pallas import tpu as pltpu


def _get_padding(kernel_size: int, dilation: int):
    # cc.get_padding(kernel_size, dilation=d), mode="centered", stride=1
    full = (kernel_size - 1) * dilation
    left = full // 2
    return left, full - left


def _choose_time_tile(T: int) -> int:
    # Prefer a lane-dense (multiple-of-128) tile and >=2 tiles so the grid can
    # be sharded across TensorCores (v7x megacore) and pipelined.
    for cand in (1024, 512, 256, 128):
        if T % cand == 0 and T // cand >= 2:
            return cand
    for cand in (1024, 512, 256, 128):
        if T % cand == 0:
            return cand
    return T  # fallback: single (possibly lane-sparse) tile


def _build_block_call(B, C, T, TT, K, plan, use_bf16):
    """plan: tuple per layer of tuple per conv of (dilation, pad_left, pad_right)."""
    nt = T // TT
    n_convs = sum(len(layer) for layer in plan)
    Lsum = sum(l for layer in plan for (_, l, _) in layer)
    Rsum = sum(r for layer in plan for (_, _, r) in layer)
    KC = K * C
    W0 = TT + Lsum + Rsum  # width of the haloed input window per tile

    def kernel(xl_ref, xc_ref, xr_ref, w_ref, b_ref, o_ref, win_ref, stk_ref):
        t = pl.program_id(1)

        # ---- assemble haloed window covering global [t*TT - Lsum, t*TT+TT+Rsum)
        # Halo columns come from the neighbouring time tiles; columns outside
        # the real sequence [0, T) are zeroed (== reference zero padding).
        if Lsum > 0:
            lp = xl_ref[:, TT - Lsum:]
            win_ref[:, :Lsum] = jnp.where(t > 0, lp, 0.0)
        win_ref[:, Lsum:Lsum + TT] = xc_ref[...]
        if Rsum > 0:
            rp = xr_ref[:, :Rsum]
            win_ref[:, Lsum + TT:] = jnp.where(t < nt - 1, rp, 0.0)

        cur = win_ref[...]   # (C, W0) f32
        off = -Lsum          # offset (relative to t*TT) of column 0 of `cur`
        width = W0

        ci = 0
        for layer in plan:                                  # static unroll
            x_in, x_off = cur, off                          # residual branch
            y, y_off, y_w = cur, off, width
            for (d, l, r) in layer:                         # static unroll
                # LeakyReLU(0.2) in f32 (VPU); zeros stay zero.
                a = jnp.where(y > 0, y, 0.2 * y)
                new_w = y_w - l - r
                # Stack the K taps -> one deep-contraction MXU matmul.
                for k in range(K):
                    stk_ref[k * C:(k + 1) * C, :new_w] = a[:, k * d:k * d + new_w]
                stk = stk_ref[:, :new_w]
                if use_bf16:
                    stk = stk.astype(jnp.bfloat16)          # cast MXU input only
                out = jnp.dot(w_ref[ci], stk,
                              preferred_element_type=jnp.float32)
                out = out + b_ref[ci]                       # (C,1) broadcast, f32
                new_off = y_off + l
                # Reference zero-pads every conv input at the true sequence
                # boundary, so out-of-sequence halo values must be zeroed before
                # feeding the next conv.  Only needed while a halo remains.
                if new_off < 0 or new_off + new_w > TT:
                    col = lax.broadcasted_iota(jnp.int32, (1, new_w), 1) + new_off
                    valid = ((col >= 0) | (t > 0)) & ((col < TT) | (t < nt - 1))
                    out = jnp.where(valid, out, 0.0)
                y, y_off, y_w = out, new_off, new_w
                ci += 1
            # Residual add (ResidualLayer): align layer input to y's window.
            so = y_off - x_off
            cur = y + x_in[:, so:so + y_w]
            off, width = y_off, y_w

        assert width == TT and off == 0  # window shrank exactly to output tile
        o_ref[...] = cur.astype(o_ref.dtype)

    x_block = (pl.Squeezed(), C, TT)
    in_specs = [
        # left / centre / right time tiles (neighbours provide the halo).
        pl.BlockSpec(x_block, lambda b, tt: (b, 0, jnp.maximum(tt - 1, 0))),
        pl.BlockSpec(x_block, lambda b, tt: (b, 0, tt)),
        pl.BlockSpec(x_block, lambda b, tt: (b, 0, jnp.minimum(tt + 1, nt - 1))),
        # all conv weights / biases: constant block index -> VMEM-resident.
        pl.BlockSpec((n_convs, C, KC), lambda b, tt: (0, 0, 0)),
        pl.BlockSpec((n_convs, C, 1), lambda b, tt: (0, 0, 0)),
    ]
    out_spec = pl.BlockSpec(x_block, lambda b, tt: (b, 0, tt))

    return pl.pallas_call(
        kernel,
        out_shape=jax.ShapeDtypeStruct((B, C, T), jnp.float32),
        grid_spec=pltpu.PrefetchScalarGridSpec(
            num_scalar_prefetch=0,
            grid=(B, nt),
            in_specs=in_specs,
            out_specs=out_spec,
            scratch_shapes=[
                pltpu.VMEM((C, W0), jnp.float32),    # haloed input window
                pltpu.VMEM((KC, W0), jnp.float32),   # stacked-tap matmul RHS
            ],
        ),
        compiler_params=pltpu.CompilerParams(
            dimension_semantics=("parallel", "parallel"),
            vmem_limit_bytes=48 * 1024 * 1024,
        ),
    )


def residual_block_pallas(x, weights, biases, dilations_list, kernel_size,
                          *, time_tile=None, use_bf16=True):
    """Fused ResidualBlock forward.

    x:       (B, C, T) float32, PyTorch NCT layout.
    weights: list (one per conv, layer-major order) of (Cout, Cin, K) arrays.
    biases:  list of (C,) arrays.
    """
    B, C, T = x.shape
    K = kernel_size
    plan = tuple(tuple((d,) + _get_padding(K, d) for d in dil)
                 for dil in dilations_list)
    Lsum = sum(l for layer in plan for (_, l, _) in layer)
    Rsum = sum(r for layer in plan for (_, _, r) in layer)

    TT = time_tile if time_tile is not None else _choose_time_tile(T)
    if T % TT != 0:
        TT = T
    if max(Lsum, Rsum) > TT:   # halo must fit inside one neighbouring tile
        TT = T
    if max(Lsum, Rsum) > T:
        raise ValueError("receptive-field halo larger than the sequence")

    w_dtype = jnp.bfloat16 if use_bf16 else jnp.float32
    # (Cout, Cin, K) -> (Cout, K*Cin); row-block k holds tap k, matching the
    # stacked activation built inside the kernel.
    w_all = jnp.stack([jnp.transpose(w, (0, 2, 1)).reshape(C, K * C)
                       for w in weights]).astype(w_dtype)
    b_all = jnp.stack(biases).reshape(len(biases), C, 1).astype(jnp.float32)

    call = _build_block_call(B, C, T, TT, K, plan, use_bf16)
    return call(x, x, x, w_all, b_all)


# ----------------------------- pure-JAX reference ----------------------------
def _ref_block(x, weights, biases, dilations_list, K):
    T = x.shape[-1]
    ci = 0
    for dil in dilations_list:
        y = x
        for d in dil:
            w, b = weights[ci], biases[ci]
            ci += 1
            a = jnp.where(y > 0, y, 0.2 * y)
            l, r = _get_padding(K, d)
            ap = jnp.pad(a, ((0, 0), (0, 0), (l, r)))
            out = jnp.zeros_like(x)
            for k in range(K):
                out = out + jnp.einsum("oi,bit->bot", w[:, :, k],
                                       ap[:, :, k * d:k * d + T])
            y = out + b[None, :, None]
        x = x + y
    return x


# ---------------------------------- main -------------------------------------
if __name__ == "__main__":
    B, C, T = 2, 8, 256          # batch, dim (channels), time
    K = 3                        # kernel_size
    dilations_list = ((1, 1), (3, 1), (5, 1))

    key = jax.random.PRNGKey(0)
    key, kx = jax.random.split(key)
    x = jax.random.normal(kx, (B, C, T), dtype=jnp.float32)

    # Deterministic synthetic parameters, PyTorch Conv1d layout (Cout, Cin, K).
    weights, biases = [], []
    for dil in dilations_list:
        for _ in dil:
            key, kw, kb = jax.random.split(key, 3)
            weights.append(0.1 * jax.random.normal(kw, (C, C, K), dtype=jnp.float32))
            biases.append(0.1 * jax.random.normal(kb, (C,), dtype=jnp.float32))

    ref = _ref_block(x, weights, biases, dilations_list, K)

    # Exact f32-MXU path (tight check; T=256 -> two 128-wide tiles, exercises halo logic).
    out_f32 = jax.block_until_ready(
        residual_block_pallas(x, weights, biases, dilations_list, K, use_bf16=False))
    assert out_f32.shape == (B, C, T)
    assert jnp.allclose(out_f32, ref, rtol=1e-4, atol=1e-4), "f32 mismatch vs reference"

    # bf16-MXU / f32-accumulate fast path (recommended on v6e/v7x).
    out_bf16 = jax.block_until_ready(
        residual_block_pallas(x, weights, biases, dilations_list, K, use_bf16=True))
    assert jnp.allclose(out_bf16, ref, rtol=5e-2, atol=5e-2), "bf16 mismatch vs reference"

    # Single-tile fallback (T not a multiple of 128).
    x2 = x[:, :, :160]
    ref2 = _ref_block(x2, weights, biases, dilations_list, K)
    out2 = jax.block_until_ready(
        residual_block_pallas(x2, weights, biases, dilations_list, K, use_bf16=False))
    assert jnp.allclose(out2, ref2, rtol=1e-4, atol=1e-4), "single-tile mismatch vs reference"

    print("KERNEL_OK")
</pallas_src>

<mosaic_0001>
module attributes {stable_mosaic.version = 11 : i64} {
  func.func @kernel(%arg0: i32, %arg1: i32, %arg2: memref<1x8x128xf32, #tpu.memory_space<vmem>>, %arg3: memref<1x8x128xf32, #tpu.memory_space<vmem>>, %arg4: memref<1x8x128xf32, #tpu.memory_space<vmem>>, %arg5: memref<6x8x24xf32, #tpu.memory_space<vmem>>, %arg6: memref<6x8x1xf32, #tpu.memory_space<vmem>>, %arg7: memref<1x8x128xf32, #tpu.memory_space<vmem>>, %arg8: memref<8x152xf32, #tpu.memory_space<vmem>>, %arg9: memref<24x152xf32, #tpu.memory_space<vmem>>) attributes {dimension_semantics = [#tpu.dimension_semantics<parallel>, #tpu.dimension_semantics<parallel>], iteration_bounds = array<i64: 2, 2>, scalar_prefetch = 0 : i64, scratch_operands = 2 : i64, tpu.core_type = #tpu.core_type<tc>, window_params = [{transform_indices = @transform_0, window_bounds = array<i64: 1, 8, 128>}, {transform_indices = @transform_1, window_bounds = array<i64: 1, 8, 128>}, {transform_indices = @transform_2, window_bounds = array<i64: 1, 8, 128>}, {pipeline_mode = #tpu.pipeline_mode<synchronous>, transform_indices = @transform_3, window_bounds = array<i64: 6, 8, 24>}, {pipeline_mode = #tpu.pipeline_mode<synchronous>, transform_indices = @transform_4, window_bounds = array<i64: 6, 8, 1>}, {transform_indices = @transform_5, window_bounds = array<i64: 1, 8, 128>}]} {
    %c0 = arith.constant 0 : index
    %c0_0 = arith.constant 0 : index
    %c116 = arith.constant 116 : index
    %0 = vector.load %arg2[%c0, %c0_0, %c116] : memref<1x8x128xf32, #tpu.memory_space<vmem>>, vector<1x8x12xf32>
    %1 = vector.shape_cast %0 : vector<1x8x12xf32> to vector<8x12xf32>
    %c0_i32 = arith.constant 0 : i32
    %2 = arith.cmpi sgt, %arg1, %c0_i32 : i32
    %cst = arith.constant 0.000000e+00 : f32
    %3 = vector.broadcast %cst : f32 to vector<8x12xf32>
    %4 = arith.select %2, %1, %3 : vector<8x12xf32>
    %c0_1 = arith.constant 0 : index
    %c0_2 = arith.constant 0 : index
    %5 = vector.load %arg8[%c0_1, %c0_2] : memref<8x152xf32, #tpu.memory_space<vmem>>, vector<8x12xf32>
    tpu.vector_store %arg8[%c0_1, %c0_2], %4 {strides = array<i32>} : memref<8x152xf32, #tpu.memory_space<vmem>>, vector<8x12xf32>,
    %c0_3 = arith.constant 0 : index
    %c0_4 = arith.constant 0 : index
    %c0_5 = arith.constant 0 : index
    %6 = vector.load %arg3[%c0_3, %c0_4, %c0_5] : memref<1x8x128xf32, #tpu.memory_space<vmem>>, vector<1x8x128xf32>
    %7 = vector.shape_cast %6 : vector<1x8x128xf32> to vector<8x128xf32>
    %c0_6 = arith.constant 0 : index
    %c12 = arith.constant 12 : index
    %8 = vector.load %arg8[%c0_6, %c12] : memref<8x152xf32, #tpu.memory_space<vmem>>, vector<8x128xf32>
    tpu.vector_store %arg8[%c0_6, %c12], %7 {strides = array<i32>} : memref<8x152xf32, #tpu.memory_space<vmem>>, vector<8x128xf32>,
    %c0_7 = arith.constant 0 : index
    %c0_8 = arith.constant 0 : index
    %c0_9 = arith.constant 0 : index
    %9 = vector.load %arg4[%c0_7, %c0_8, %c0_9] : memref<1x8x128xf32, #tpu.memory_space<vmem>>, vector<1x8x12xf32>
    %10 = vector.shape_cast %9 : vector<1x8x12xf32> to vector<8x12xf32>
    %c1_i32 = arith.constant 1 : i32
    %11 = arith.cmpi slt, %arg1, %c1_i32 : i32
    %cst_10 = arith.constant 0.000000e+00 : f32
    %12 = vector.broadcast %cst_10 : f32 to vector<8x12xf32>
    %13 = arith.select %11, %10, %12 : vector<8x12xf32>
    %c0_11 = arith.constant 0 : index
    %c140 = arith.constant 140 : index
    %14 = vector.load %arg8[%c0_11, %c140] : memref<8x152xf32, #tpu.memory_space<vmem>>, vector<8x12xf32>
    tpu.vector_store %arg8[%c0_11, %c140], %13 {strides = array<i32>} : memref<8x152xf32, #tpu.memory_space<vmem>>, vector<8x12xf32>,
    %c0_12 = arith.constant 0 : index
    %c0_13 = arith.constant 0 : index
    %15 = vector.load %arg8[%c0_12, %c0_13] : memref<8x152xf32, #tpu.memory_space<vmem>>, vector<8x152xf32>
    %cst_14 = arith.constant 0.000000e+00 : f32
    %16 = vector.broadcast %cst_14 : f32 to vector<8x152xf32>
    %17 = arith.cmpf ogt, %15, %16 : vector<8x152xf32>
    %cst_15 = arith.constant 2.000000e-01 : f32
    %18 = vector.broadcast %cst_15 : f32 to vector<8x152xf32>
    %19 = arith.mulf %18, %15 : vector<8x152xf32>
    %20 = arith.select %17, %15, %19 : vector<8x152xi1>, vector<8x152xf32>
    %21 = vector.extract_strided_slice %20 {offsets = [0, 0], sizes = [8, 150], strides = [1, 1]} : vector<8x152xf32> to vector<8x150xf32>
    %c0_16 = arith.constant 0 : index
    %c0_17 = arith.constant 0 : index
    %22 = vector.load %arg9[%c0_16, %c0_17] : memref<24x152xf32, #tpu.memory_space<vmem>>, vector<8x150xf32>
    tpu.vector_store %arg9[%c0_16, %c0_17], %21 {strides = array<i32>} : memref<24x152xf32, #tpu.memory_space<vmem>>, vector<8x150xf32>,
    %23 = vector.extract_strided_slice %20 {offsets = [0, 1], sizes = [8, 150], strides = [1, 1]} : vector<8x152xf32> to vector<8x150xf32>
    %c8 = arith.constant 8 : index
    %c0_18 = arith.constant 0 : index
    %24 = vector.load %arg9[%c8, %c0_18] : memref<24x152xf32, #tpu.memory_space<vmem>>, vector<8x150xf32>
    tpu.vector_store %arg9[%c8, %c0_18], %23 {strides = array<i32>} : memref<24x152xf32, #tpu.memory_space<vmem>>, vector<8x150xf32>,
    %25 = vector.extract_strided_slice %20 {offsets = [0, 2], sizes = [8, 150], strides = [1, 1]} : vector<8x152xf32> to vector<8x150xf32>
    %c16 = arith.constant 16 : index
    %c0_19 = arith.constant 0 : index
    %26 = vector.load %arg9[%c16, %c0_19] : memref<24x152xf32, #tpu.memory_space<vmem>>, vector<8x150xf32>
    tpu.vector_store %arg9[%c16, %c0_19], %25 {strides = array<i32>} : memref<24x152xf32, #tpu.memory_space<vmem>>, vector<8x150xf32>,
    %c0_20 = arith.constant 0 : index
    %c0_21 = arith.constant 0 : index
    %27 = vector.load %arg9[%c0_20, %c0_21] : memref<24x152xf32, #tpu.memory_space<vmem>>, vector<24x150xf32>
    %c0_22 = arith.constant 0 : index
    %c0_23 = arith.constant 0 : index
    %c0_24 = arith.constant 0 : index
    %28 = vector.load %arg5[%c0_22, %c0_23, %c0_24] : memref<6x8x24xf32, #tpu.memory_space<vmem>>, vector<1x8x24xf32>
    %29 = vector.shape_cast %28 : vector<1x8x24xf32> to vector<8x24xf32>
    %cst_25 = arith.constant dense<0.000000e+00> : vector<8x150xf32>
    %30 = tpu.matmul %29, %27, %cst_25 {dimension_numbers = #tpu.dot_dimension_numbers<[1], [0], [0], [1], [0, 0, 1, 1], [], []>} : vector<8x24xf32>, vector<24x150xf32>, vector<8x150xf32> -> vector<8x150xf32>
    %c0_26 = arith.constant 0 : index
    %c0_27 = arith.constant 0 : index
    %c0_28 = arith.constant 0 : index
    %31 = vector.load %arg6[%c0_26, %c0_27, %c0_28] : memref<6x8x1xf32, #tpu.memory_space<vmem>>, vector<1x8x1xf32>
    %32 = vector.shape_cast %31 : vector<1x8x1xf32> to vector<8x1xf32>
    %33 = vector.broadcast %32 : vector<8x1xf32> to vector<8x150xf32>
    %34 = arith.addf %30, %33 : vector<8x150xf32>
    %35 = tpu.iota {dimensions = array<i32: 1>} : vector<1x150xi32>
    %c-11_i32 = arith.constant -11 : i32
    %36 = vector.broadcast %c-11_i32 : i32 to vector<1x150xi32>
    %37 = arith.addi %35, %36 : vector<1x150xi32>
    %c0_i32_29 = arith.constant 0 : i32
    %38 = vector.broadcast %c0_i32_29 : i32 to vector<1x150xi32>
    %39 = arith.cmpi sge, %37, %38 : vector<1x150xi32>
    %c0_i32_30 = arith.constant 0 : i32
    %40 = arith.cmpi sgt, %arg1, %c0_i32_30 : i32
    %41 = vector.broadcast %40 : i1 to vector<1x150xi1>
    %42 = arith.ori %39, %41 : vector<1x150xi1>
    %c128_i32 = arith.constant 128 : i32
    %43 = vector.broadcast %c128_i32 : i32 to vector<1x150xi32>
    %44 = arith.cmpi slt, %37, %43 : vector<1x150xi32>
    %c1_i32_31 = arith.constant 1 : i32
    %45 = arith.cmpi slt, %arg1, %c1_i32_31 : i32
    %46 = vector.broadcast %45 : i1 to vector<1x150xi1>
    %47 = arith.ori %44, %46 : vector<1x150xi1>
    %48 = arith.andi %42, %47 : vector<1x150xi1>
    %cst_32 = arith.constant 0.000000e+00 : f32
    %49 = vector.shape_cast %48 : vector<1x150xi1> to vector<1x150xi1>
    %50 = vector.broadcast %49 : vector<1x150xi1> to vector<8x150xi1>
    %51 = vector.broadcast %cst_32 : f32 to vector<8x150xf32>
    %52 = arith.select %50, %34, %51 : vector<8x150xi1>, vector<8x150xf32>
    %cst_33 = arith.constant 0.000000e+00 : f32
    %53 = vector.broadcast %cst_33 : f32 to vector<8x150xf32>
    %54 = arith.cmpf ogt, %52, %53 : vector<8x150xf32>
    %cst_34 = arith.constant 2.000000e-01 : f32
    %55 = vector.broadcast %cst_34 : f32 to vector<8x150xf32>
    %56 = arith.mulf %55, %52 : vector<8x150xf32>
    %57 = arith.select %54, %52, %56 : vector<8x150xi1>, vector<8x150xf32>
    %58 = vector.extract_strided_slice %57 {offsets = [0, 0], sizes = [8, 148], strides = [1, 1]} : vector<8x150xf32> to vector<8x148xf32>
    %c0_35 = arith.constant 0 : index
    %c0_36 = arith.constant 0 : index
    %59 = vector.load %arg9[%c0_35, %c0_36] : memref<24x152xf32, #tpu.memory_space<vmem>>, vector<8x148xf32>
    tpu.vector_store %arg9[%c0_35, %c0_36], %58 {strides = array<i32>} : memref<24x152xf32, #tpu.memory_space<vmem>>, vector<8x148xf32>,
    %60 = vector.extract_strided_slice %57 {offsets = [0, 1], sizes = [8, 148], strides = [1, 1]} : vector<8x150xf32> to vector<8x148xf32>
    %c8_37 = arith.constant 8 : index
    %c0_38 = arith.constant 0 : index
    %61 = vector.load %arg9[%c8_37, %c0_38] : memref<24x152xf32, #tpu.memory_space<vmem>>, vector<8x148xf32>
    tpu.vector_store %arg9[%c8_37, %c0_38], %60 {strides = array<i32>} : memref<24x152xf32, #tpu.memory_space<vmem>>, vector<8x148xf32>,
    %62 = vector.extract_strided_slice %57 {offsets = [0, 2], sizes = [8, 148], strides = [1, 1]} : vector<8x150xf32> to vector<8x148xf32>
    %c16_39 = arith.constant 16 : index
    %c0_40 = arith.constant 0 : index
    %63 = vector.load %arg9[%c16_39, %c0_40] : memref<24x152xf32, #tpu.memory_space<vmem>>, vector<8x148xf32>
    tpu.vector_store %arg9[%c16_39, %c0_40], %62 {strides = array<i32>} : memref<24x152xf32, #tpu.memory_space<vmem>>, vector<8x148xf32>,
    %c0_41 = arith.constant 0 : index
    %c0_42 = arith.constant 0 : index
    %64 = vector.load %arg9[%c0_41, %c0_42] : memref<24x152xf32, #tpu.memory_space<vmem>>, vector<24x148xf32>
    %c1 = arith.constant 1 : index
    %c0_43 = arith.constant 0 : index
    %c0_44 = arith.constant 0 : index
    %65 = vector.load %arg5[%c1, %c0_43, %c0_44] : memref<6x8x24xf32, #tpu.memory_space<vmem>>, vector<1x8x24xf32>
    %66 = vector.shape_cast %65 : vector<1x8x24xf32> to vector<8x24xf32>
    %cst_45 = arith.constant dense<0.000000e+00> : vector<8x148xf32>
    %67 = tpu.matmul %66, %64, %cst_45 {dimension_numbers = #tpu.dot_dimension_numbers<[1], [0], [0], [1], [0, 0, 1, 1], [], []>} : vector<8x24xf32>, vector<24x148xf32>, vector<8x148xf32> -> vector<8x148xf32>
    %c1_46 = arith.constant 1 : index
    %c0_47 = arith.constant 0 : index
    %c0_48 = arith.constant 0 : index
    %68 = vector.load %arg6[%c1_46, %c0_47, %c0_48] : memref<6x8x1xf32, #tpu.memory_space<vmem>>, vector<1x8x1xf32>
    %69 = vector.shape_cast %68 : vector<1x8x1xf32> to vector<8x1xf32>
    %70 = vector.broadcast %69 : vector<8x1xf32> to vector<8x148xf32>
    %71 = arith.addf %67, %70 : vector<8x148xf32>
    %72 = tpu.iota {dimensions = array<i32: 1>} : vector<1x148xi32>
    %c-10_i32 = arith.constant -10 : i32
    %73 = vector.broadcast %c-10_i32 : i32 to vector<1x148xi32>
    %74 = arith.addi %72, %73 : vector<1x148xi32>
    %c0_i32_49 = arith.constant 0 : i32
    %75 = vector.broadcast %c0_i32_49 : i32 to vector<1x148xi32>
    %76 = arith.cmpi sge, %74, %75 : vector<1x148xi32>
    %c0_i32_50 = arith.constant 0 : i32
    %77 = arith.cmpi sgt, %arg1, %c0_i32_50 : i32
    %78 = vector.broadcast %77 : i1 to vector<1x148xi1>
    %79 = arith.ori %76, %78 : vector<1x148xi1>
    %c128_i32_51 = arith.constant 128 : i32
    %80 = vector.broadcast %c128_i32_51 : i32 to vector<1x148xi32>
    %81 = arith.cmpi slt, %74, %80 : vector<1x148xi32>
    %c1_i32_52 = arith.constant 1 : i32
    %82 = arith.cmpi slt, %arg1, %c1_i32_52 : i32
    %83 = vector.broadcast %82 : i1 to vector<1x148xi1>
    %84 = arith.ori %81, %83 : vector<1x148xi1>
    %85 = arith.andi %79, %84 : vector<1x148xi1>
    %cst_53 = arith.constant 0.000000e+00 : f32
    %86 = vector.shape_cast %85 : vector<1x148xi1> to vector<1x148xi1>
    %87 = vector.broadcast %86 : vector<1x148xi1> to vector<8x148xi1>
    %88 = vector.broadcast %cst_53 : f32 to vector<8x148xf32>
    %89 = arith.select %87, %71, %88 : vector<8x148xi1>, vector<8x148xf32>
    %90 = vector.extract_strided_slice %15 {offsets = [0, 2], sizes = [8, 148], strides = [1, 1]} : vector<8x152xf32> to vector<8x148xf32>
    %91 = arith.addf %89, %90 : vector<8x148xf32>
    %cst_54 = arith.constant 0.000000e+00 : f32
    %92 = vector.broadcast %cst_54 : f32 to vector<8x148xf32>
    %93 = arith.cmpf ogt, %91, %92 : vector<8x148xf32>
    %cst_55 = arith.constant 2.000000e-01 : f32
    %94 = vector.broadcast %cst_55 : f32 to vector<8x148xf32>
    %95 = arith.mulf %94, %91 : vector<8x148xf32>
    %96 = arith.select %93, %91, %95 : vector<8x148xi1>, vector<8x148xf32>
    %97 = vector.extract_strided_slice %96 {offsets = [0, 0], sizes = [8, 142], strides = [1, 1]} : vector<8x148xf32> to vector<8x142xf32>
    %c0_56 = arith.constant 0 : index
    %c0_57 = arith.constant 0 : index
    %98 = vector.load %arg9[%c0_56, %c0_57] : memref<24x152xf32, #tpu.memory_space<vmem>>, vector<8x142xf32>
    tpu.vector_store %arg9[%c0_56, %c0_57], %97 {strides = array<i32>} : memref<24x152xf32, #tpu.memory_space<vmem>>, vector<8x142xf32>,
    %99 = vector.extract_strided_slice %96 {offsets = [0, 3], sizes = [8, 142], strides = [1, 1]} : vector<8x148xf32> to vector<8x142xf32>
    %c8_58 = arith.constant 8 : index
    %c0_59 = arith.constant 0 : index
    %100 = vector.load %arg9[%c8_58, %c0_59] : memref<24x152xf32, #tpu.memory_space<vmem>>, vector<8x142xf32>
    tpu.vector_store %arg9[%c8_58, %c0_59], %99 {strides = array<i32>} : memref<24x152xf32, #tpu.memory_space<vmem>>, vector<8x142xf32>,
    %101 = vector.extract_strided_slice %96 {offsets = [0, 6], sizes = [8, 142], strides = [1, 1]} : vector<8x148xf32> to vector<8x142xf32>
    %c16_60 = arith.constant 16 : index
    %c0_61 = arith.constant 0 : index
    %102 = vector.load %arg9[%c16_60, %c0_61] : memref<24x152xf32, #tpu.memory_space<vmem>>, vector<8x142xf32>
    tpu.vector_store %arg9[%c16_60, %c0_61], %101 {strides = array<i32>} : memref<24x152xf32, #tpu.memory_space<vmem>>, vector<8x142xf32>,
    %c0_62 = arith.constant 0 : index
    %c0_63 = arith.constant 0 : index
    %103 = vector.load %arg9[%c0_62, %c0_63] : memref<24x152xf32, #tpu.memory_space<vmem>>, vector<24x142xf32>
    %c2 = arith.constant 2 : index
    %c0_64 = arith.constant 0 : index
    %c0_65 = arith.constant 0 : index
    %104 = vector.load %arg5[%c2, %c0_64, %c0_65] : memref<6x8x24xf32, #tpu.memory_space<vmem>>, vector<1x8x24xf32>
    %105 = vector.shape_cast %104 : vector<1x8x24xf32> to vector<8x24xf32>
    %cst_66 = arith.constant dense<0.000000e+00> : vector<8x142xf32>
    %106 = tpu.matmul %105, %103, %cst_66 {dimension_numbers = #tpu.dot_dimension_numbers<[1], [0], [0], [1], [0, 0, 1, 1], [], []>} : vector<8x24xf32>, vector<24x142xf32>, vector<8x142xf32> -> vector<8x142xf32>
    %c2_67 = arith.constant 2 : index
    %c0_68 = arith.constant 0 : index
    %c0_69 = arith.constant 0 : index
    %107 = vector.load %arg6[%c2_67, %c0_68, %c0_69] : memref<6x8x1xf32, #tpu.memory_space<vmem>>, vector<1x8x1xf32>
    %108 = vector.shape_cast %107 : vector<1x8x1xf32> to vector<8x1xf32>
    %109 = vector.broadcast %108 : vector<8x1xf32> to vector<8x142xf32>
    %110 = arith.addf %106, %109 : vector<8x142xf32>
    %111 = tpu.iota {dimensions = array<i32: 1>} : vector<1x142xi32>
    %c-7_i32 = arith.constant -7 : i32
    %112 = vector.broadcast %c-7_i32 : i32 to vector<1x142xi32>
    %113 = arith.addi %111, %112 : vector<1x142xi32>
    %c0_i32_70 = arith.constant 0 : i32
    %114 = vector.broadcast %c0_i32_70 : i32 to vector<1x142xi32>
    %115 = arith.cmpi sge, %113, %114 : vector<1x142xi32>
    %c0_i32_71 = arith.constant 0 : i32
    %116 = arith.cmpi sgt, %arg1, %c0_i32_71 : i32
    %117 = vector.broadcast %116 : i1 to vector<1x142xi1>
    %118 = arith.ori %115, %117 : vector<1x142xi1>
    %c128_i32_72 = arith.constant 128 : i32
    %119 = vector.broadcast %c128_i32_72 : i32 to vector<1x142xi32>
    %120 = arith.cmpi slt, %113, %119 : vector<1x142xi32>
    %c1_i32_73 = arith.constant 1 : i32
    %121 = arith.cmpi slt, %arg1, %c1_i32_73 : i32
    %122 = vector.broadcast %121 : i1 to vector<1x142xi1>
    %123 = arith.ori %120, %122 : vector<1x142xi1>
    %124 = arith.andi %118, %123 : vector<1x142xi1>
    %cst_74 = arith.constant 0.000000e+00 : f32
    %125 = vector.shape_cast %124 : vector<1x142xi1> to vector<1x142xi1>
    %126 = vector.broadcast %125 : vector<1x142xi1> to vector<8x142xi1>
    %127 = vector.broadcast %cst_74 : f32 to vector<8x142xf32>
    %128 = arith.select %126, %110, %127 : vector<8x142xi1>, vector<8x142xf32>
    %cst_75 = arith.constant 0.000000e+00 : f32
    %129 = vector.broadcast %cst_75 : f32 to vector<8x142xf32>
    %130 = arith.cmpf ogt, %128, %129 : vector<8x142xf32>
    %cst_76 = arith.constant 2.000000e-01 : f32
    %131 = vector.broadcast %cst_76 : f32 to vector<8x142xf32>
    %132 = arith.mulf %131, %128 : vector<8x142xf32>
    %133 = arith.select %130, %128, %132 : vector<8x142xi1>, vector<8x142xf32>
    %134 = vector.extract_strided_slice %133 {offsets = [0, 0], sizes = [8, 140], strides = [1, 1]} : vector<8x142xf32> to vector<8x140xf32>
    %c0_77 = arith.constant 0 : index
    %c0_78 = arith.constant 0 : index
    %135 = vector.load %arg9[%c0_77, %c0_78] : memref<24x152xf32, #tpu.memory_space<vmem>>, vector<8x140xf32>
    tpu.vector_store %arg9[%c0_77, %c0_78], %134 {strides = array<i32>} : memref<24x152xf32, #tpu.memory_space<vmem>>, vector<8x140xf32>,
    %136 = vector.extract_strided_slice %133 {offsets = [0, 1], sizes = [8, 140], strides = [1, 1]} : vector<8x142xf32> to vector<8x140xf32>
    %c8_79 = arith.constant 8 : index
    %c0_80 = arith.constant 0 : index
    %137 = vector.load %arg9[%c8_79, %c0_80] : memref<24x152xf32, #tpu.memory_space<vmem>>, vector<8x140xf32>
    tpu.vector_store %arg9[%c8_79, %c0_80], %136 {strides = array<i32>} : memref<24x152xf32, #tpu.memory_space<vmem>>, vector<8x140xf32>,
    %138 = vector.extract_strided_slice %133 {offsets = [0, 2], sizes = [8, 140], strides = [1, 1]} : vector<8x142xf32> to vector<8x140xf32>
    %c16_81 = arith.constant 16 : index
    %c0_82 = arith.constant 0 : index
    %139 = vector.load %arg9[%c16_81, %c0_82] : memref<24x152xf32, #tpu.memory_space<vmem>>, vector<8x140xf32>
    tpu.vector_store %arg9[%c16_81, %c0_82], %138 {strides = array<i32>} : memref<24x152xf32, #tpu.memory_space<vmem>>, vector<8x140xf32>,
    %c0_83 = arith.constant 0 : index
    %c0_84 = arith.constant 0 : index
    %140 = vector.load %arg9[%c0_83, %c0_84] : memref<24x152xf32, #tpu.memory_space<vmem>>, vector<24x140xf32>
    %c3 = arith.constant 3 : index
    %c0_85 = arith.constant 0 : index
    %c0_86 = arith.constant 0 : index
    %141 = vector.load %arg5[%c3, %c0_85, %c0_86] : memref<6x8x24xf32, #tpu.memory_space<vmem>>, vector<1x8x24xf32>
    %142 = vector.shape_cast %141 : vector<1x8x24xf32> to vector<8x24xf32>
    %cst_87 = arith.constant dense<0.000000e+00> : vector<8x140xf32>
    %143 = tpu.matmul %142, %140, %cst_87 {dimension_numbers = #tpu.dot_dimension_numbers<[1], [0], [0], [1], [0, 0, 1, 1], [], []>} : vector<8x24xf32>, vector<24x140xf32>, vector<8x140xf32> -> vector<8x140xf32>
    %c3_88 = arith.constant 3 : index
    %c0_89 = arith.constant 0 : index
    %c0_90 = arith.constant 0 : index
    %144 = vector.load %arg6[%c3_88, %c0_89, %c0_90] : memref<6x8x1xf32, #tpu.memory_space<vmem>>, vector<1x8x1xf32>
    %145 = vector.shape_cast %144 : vector<1x8x1xf32> to vector<8x1xf32>
    %146 = vector.broadcast %145 : vector<8x1xf32> to vector<8x140xf32>
    %147 = arith.addf %143, %146 : vector<8x140xf32>
    %148 = tpu.iota {dimensions = array<i32: 1>} : vector<1x140xi32>
    %c-6_i32 = arith.constant -6 : i32
    %149 = vector.broadcast %c-6_i32 : i32 to vector<1x140xi32>
    %150 = arith.addi %148, %149 : vector<1x140xi32>
    %c0_i32_91 = arith.constant 0 : i32
    %151 = vector.broadcast %c0_i32_91 : i32 to vector<1x140xi32>
    %152 = arith.cmpi sge, %150, %151 : vector<1x140xi32>
    %c0_i32_92 = arith.constant 0 : i32
    %153 = arith.cmpi sgt, %arg1, %c0_i32_92 : i32
    %154 = vector.broadcast %153 : i1 to vector<1x140xi1>
    %155 = arith.ori %152, %154 : vector<1x140xi1>
    %c128_i32_93 = arith.constant 128 : i32
    %156 = vector.broadcast %c128_i32_93 : i32 to vector<1x140xi32>
    %157 = arith.cmpi slt, %150, %156 : vector<1x140xi32>
    %c1_i32_94 = arith.constant 1 : i32
    %158 = arith.cmpi slt, %arg1, %c1_i32_94 : i32
    %159 = vector.broadcast %158 : i1 to vector<1x140xi1>
    %160 = arith.ori %157, %159 : vector<1x140xi1>
    %161 = arith.andi %155, %160 : vector<1x140xi1>
    %cst_95 = arith.constant 0.000000e+00 : f32
    %162 = vector.shape_cast %161 : vector<1x140xi1> to vector<1x140xi1>
    %163 = vector.broadcast %162 : vector<1x140xi1> to vector<8x140xi1>
    %164 = vector.broadcast %cst_95 : f32 to vector<8x140xf32>
    %165 = arith.select %163, %147, %164 : vector<8x140xi1>, vector<8x140xf32>
    %166 = vector.extract_strided_slice %91 {offsets = [0, 4], sizes = [8, 140], strides = [1, 1]} : vector<8x148xf32> to vector<8x140xf32>
    %167 = arith.addf %165, %166 : vector<8x140xf32>
    %cst_96 = arith.constant 0.000000e+00 : f32
    %168 = vector.broadcast %cst_96 : f32 to vector<8x140xf32>
    %169 = arith.cmpf ogt, %167, %168 : vector<8x140xf32>
    %cst_97 = arith.constant 2.000000e-01 : f32
    %170 = vector.broadcast %cst_97 : f32 to vector<8x140xf32>
    %171 = arith.mulf %170, %167 : vector<8x140xf32>
    %172 = arith.select %169, %167, %171 : vector<8x140xi1>, vector<8x140xf32>
    %173 = vector.extract_strided_slice %172 {offsets = [0, 0], sizes = [8, 130], strides = [1, 1]} : vector<8x140xf32> to vector<8x130xf32>
    %c0_98 = arith.constant 0 : index
    %c0_99 = arith.constant 0 : index
    %174 = vector.load %arg9[%c0_98, %c0_99] : memref<24x152xf32, #tpu.memory_space<vmem>>, vector<8x130xf32>
    tpu.vector_store %arg9[%c0_98, %c0_99], %173 {strides = array<i32>} : memref<24x152xf32, #tpu.memory_space<vmem>>, vector<8x130xf32>,
    %175 = vector.extract_strided_slice %172 {offsets = [0, 5], sizes = [8, 130], strides = [1, 1]} : vector<8x140xf32> to vector<8x130xf32>
    %c8_100 = arith.constant 8 : index
    %c0_101 = arith.constant 0 : index
    %176 = vector.load %arg9[%c8_100, %c0_101] : memref<24x152xf32, #tpu.memory_space<vmem>>, vector<8x130xf32>
    tpu.vector_store %arg9[%c8_100, %c0_101], %175 {strides = array<i32>} : memref<24x152xf32, #tpu.memory_space<vmem>>, vector<8x130xf32>,
    %177 = vector.extract_strided_slice %172 {offsets = [0, 10], sizes = [8, 130], strides = [1, 1]} : vector<8x140xf32> to vector<8x130xf32>
    %c16_102 = arith.constant 16 : index
    %c0_103 = arith.constant 0 : index
    %178 = vector.load %arg9[%c16_102, %c0_103] : memref<24x152xf32, #tpu.memory_space<vmem>>, vector<8x130xf32>
    tpu.vector_store %arg9[%c16_102, %c0_103], %177 {strides = array<i32>} : memref<24x152xf32, #tpu.memory_space<vmem>>, vector<8x130xf32>,
    %c0_104 = arith.constant 0 : index
    %c0_105 = arith.constant 0 : index
    %179 = vector.load %arg9[%c0_104, %c0_105] : memref<24x152xf32, #tpu.memory_space<vmem>>, vector<24x130xf32>
    %c4 = arith.constant 4 : index
    %c0_106 = arith.constant 0 : index
    %c0_107 = arith.constant 0 : index
    %180 = vector.load %arg5[%c4, %c0_106, %c0_107] : memref<6x8x24xf32, #tpu.memory_space<vmem>>, vector<1x8x24xf32>
    %181 = vector.shape_cast %180 : vector<1x8x24xf32> to vector<8x24xf32>
    %cst_108 = arith.constant dense<0.000000e+00> : vector<8x130xf32>
    %182 = tpu.matmul %181, %179, %cst_108 {dimension_numbers = #tpu.dot_dimension_numbers<[1], [0], [0], [1], [0, 0, 1, 1], [], []>} : vector<8x24xf32>, vector<24x130xf32>, vector<8x130xf32> -> vector<8x130xf32>
    %c4_109 = arith.constant 4 : index
    %c0_110 = arith.constant 0 : index
    %c0_111 = arith.constant 0 : index
    %183 = vector.load %arg6[%c4_109, %c0_110, %c0_111] : memref<6x8x1xf32, #tpu.memory_space<vmem>>, vector<1x8x1xf32>
    %184 = vector.shape_cast %183 : vector<1x8x1xf32> to vector<8x1xf32>
    %185 = vector.broadcast %184 : vector<8x1xf32> to vector<8x130xf32>
    %186 = arith.addf %182, %185 : vector<8x130xf32>
    %187 = tpu.iota {dimensions = array<i32: 1>} : vector<1x130xi32>
    %c-1_i32 = arith.constant -1 : i32
    %188 = vector.broadcast %c-1_i32 : i32 to vector<1x130xi32>
    %189 = arith.addi %187, %188 : vector<1x130xi32>
    %c0_i32_112 = arith.constant 0 : i32
    %190 = vector.broadcast %c0_i32_112 : i32 to vector<1x130xi32>
    %191 = arith.cmpi sge, %189, %190 : vector<1x130xi32>
    %c0_i32_113 = arith.constant 0 : i32
    %192 = arith.cmpi sgt, %arg1, %c0_i32_113 : i32
    %193 = vector.broadcast %192 : i1 to vector<1x130xi1>
    %194 = arith.ori %191, %193 : vector<1x130xi1>
    %c128_i32_114 = arith.constant 128 : i32
    %195 = vector.broadcast %c128_i32_114 : i32 to vector<1x130xi32>
    %196 = arith.cmpi slt, %189, %195 : vector<1x130xi32>
    %c1_i32_115 = arith.constant 1 : i32
    %197 = arith.cmpi slt, %arg1, %c1_i32_115 : i32
    %198 = vector.broadcast %197 : i1 to vector<1x130xi1>
    %199 = arith.ori %196, %198 : vector<1x130xi1>
    %200 = arith.andi %194, %199 : vector<1x130xi1>
    %cst_116 = arith.constant 0.000000e+00 : f32
    %201 = vector.shape_cast %200 : vector<1x130xi1> to vector<1x130xi1>
    %202 = vector.broadcast %201 : vector<1x130xi1> to vector<8x130xi1>
    %203 = vector.broadcast %cst_116 : f32 to vector<8x130xf32>
    %204 = arith.select %202, %186, %203 : vector<8x130xi1>, vector<8x130xf32>
    %cst_117 = arith.constant 0.000000e+00 : f32
    %205 = vector.broadcast %cst_117 : f32 to vector<8x130xf32>
    %206 = arith.cmpf ogt, %204, %205 : vector<8x130xf32>
    %cst_118 = arith.constant 2.000000e-01 : f32
    %207 = vector.broadcast %cst_118 : f32 to vector<8x130xf32>
    %208 = arith.mulf %207, %204 : vector<8x130xf32>
    %209 = arith.select %206, %204, %208 : vector<8x130xi1>, vector<8x130xf32>
    %210 = vector.extract_strided_slice %209 {offsets = [0, 0], sizes = [8, 128], strides = [1, 1]} : vector<8x130xf32> to vector<8x128xf32>
    %c0_119 = arith.constant 0 : index
    %c0_120 = arith.constant 0 : index
    %211 = vector.load %arg9[%c0_119, %c0_120] : memref<24x152xf32, #tpu.memory_space<vmem>>, vector<8x128xf32>
    tpu.vector_store %arg9[%c0_119, %c0_120], %210 {strides = array<i32>} : memref<24x152xf32, #tpu.memory_space<vmem>>, vector<8x128xf32>,
    %212 = vector.extract_strided_slice %209 {offsets = [0, 1], sizes = [8, 128], strides = [1, 1]} : vector<8x130xf32> to vector<8x128xf32>
    %c8_121 = arith.constant 8 : index
    %c0_122 = arith.constant 0 : index
    %213 = vector.load %arg9[%c8_121, %c0_122] : memref<24x152xf32, #tpu.memory_space<vmem>>, vector<8x128xf32>
    tpu.vector_store %arg9[%c8_121, %c0_122], %212 {strides = array<i32>} : memref<24x152xf32, #tpu.memory_space<vmem>>, vector<8x128xf32>,
    %214 = vector.extract_strided_slice %209 {offsets = [0, 2], sizes = [8, 128], strides = [1, 1]} : vector<8x130xf32> to vector<8x128xf32>
    %c16_123 = arith.constant 16 : index
    %c0_124 = arith.constant 0 : index
    %215 = vector.load %arg9[%c16_123, %c0_124] : memref<24x152xf32, #tpu.memory_space<vmem>>, vector<8x128xf32>
    tpu.vector_store %arg9[%c16_123, %c0_124], %214 {strides = array<i32>} : memref<24x152xf32, #tpu.memory_space<vmem>>, vector<8x128xf32>,
    %c0_125 = arith.constant 0 : index
    %c0_126 = arith.constant 0 : index
    %216 = vector.load %arg9[%c0_125, %c0_126] : memref<24x152xf32, #tpu.memory_space<vmem>>, vector<24x128xf32>
    %c5 = arith.constant 5 : index
    %c0_127 = arith.constant 0 : index
    %c0_128 = arith.constant 0 : index
    %217 = vector.load %arg5[%c5, %c0_127, %c0_128] : memref<6x8x24xf32, #tpu.memory_space<vmem>>, vector<1x8x24xf32>
    %218 = vector.shape_cast %217 : vector<1x8x24xf32> to vector<8x24xf32>
    %cst_129 = arith.constant dense<0.000000e+00> : vector<8x128xf32>
    %219 = tpu.matmul %218, %216, %cst_129 {dimension_numbers = #tpu.dot_dimension_numbers<[1], [0], [0], [1], [0, 0, 1, 1], [], []>} : vector<8x24xf32>, vector<24x128xf32>, vector<8x128xf32> -> vector<8x128xf32>
    %c5_130 = arith.constant 5 : index
    %c0_131 = arith.constant 0 : index
    %c0_132 = arith.constant 0 : index
    %220 = vector.load %arg6[%c5_130, %c0_131, %c0_132] : memref<6x8x1xf32, #tpu.memory_space<vmem>>, vector<1x8x1xf32>
    %221 = vector.shape_cast %220 : vector<1x8x1xf32> to vector<8x1xf32>
    %222 = vector.broadcast %221 : vector<8x1xf32> to vector<8x128xf32>
    %223 = arith.addf %219, %222 : vector<8x128xf32>
    %224 = vector.extract_strided_slice %167 {offsets = [0, 6], sizes = [8, 128], strides = [1, 1]} : vector<8x140xf32> to vector<8x128xf32>
    %225 = arith.addf %223, %224 : vector<8x128xf32>
    %c0_133 = arith.constant 0 : index
    %c0_134 = arith.constant 0 : index
    %c0_135 = arith.constant 0 : index
    %226 = vector.load %arg7[%c0_133, %c0_134, %c0_135] : memref<1x8x128xf32, #tpu.memory_space<vmem>>, vector<1x8x128xf32>
    %227 = vector.shape_cast %226 : vector<1x8x128xf32> to vector<8x128xf32>
    %228 = vector.shape_cast %225 : vector<8x128xf32> to vector<1x8x128xf32>
    tpu.vector_store %arg7[%c0_133, %c0_134, %c0_135], %228 {strides = array<i32>} : memref<1x8x128xf32, #tpu.memory_space<vmem>>, vector<1x8x128xf32>,
    return
  }
  func.func @transform_0(%arg0: i32, %arg1: i32) -> (i32, i32, i32) {
    %c1_i32 = arith.constant 1 : i32
    %0 = arith.subi %arg1, %c1_i32 : i32
    %c0_i32 = arith.constant 0 : i32
    %1 = arith.maxsi %0, %c0_i32 : i32
    %c0_i32_0 = arith.constant 0 : i32
    %c0_i32_1 = arith.constant 0 : i32
    return %arg0, %c0_i32_0, %1 : i32, i32, i32
  }
  func.func @transform_1(%arg0: i32, %arg1: i32) -> (i32, i32, i32) {
    %c0_i32 = arith.constant 0 : i32
    %c0_i32_0 = arith.constant 0 : i32
    return %arg0, %c0_i32, %arg1 : i32, i32, i32
  }
  func.func @transform_2(%arg0: i32, %arg1: i32) -> (i32, i32, i32) {
    %c1_i32 = arith.constant 1 : i32
    %0 = arith.addi %arg1, %c1_i32 : i32
    %c1_i32_0 = arith.constant 1 : i32
    %1 = arith.minsi %0, %c1_i32_0 : i32
    %c0_i32 = arith.constant 0 : i32
    %c0_i32_1 = arith.constant 0 : i32
    return %arg0, %c0_i32, %1 : i32, i32, i32
  }
  func.func @transform_3(%arg0: i32, %arg1: i32) -> (i32, i32, i32) {
    %c0_i32 = arith.constant 0 : i32
    %c0_i32_0 = arith.constant 0 : i32
    %c0_i32_1 = arith.constant 0 : i32
    %c0_i32_2 = arith.constant 0 : i32
    return %c0_i32, %c0_i32_0, %c0_i32_1 : i32, i32, i32
  }
  func.func @transform_4(%arg0: i32, %arg1: i32) -> (i32, i32, i32) {
    %c0_i32 = arith.constant 0 : i32
    %c0_i32_0 = arith.constant 0 : i32
    %c0_i32_1 = arith.constant 0 : i32
    %c0_i32_2 = arith.constant 0 : i32
    return %c0_i32, %c0_i32_0, %c0_i32_1 : i32, i32, i32
  }
  func.func @transform_5(%arg0: i32, %arg1: i32) -> (i32, i32, i32) {
    %c0_i32 = arith.constant 0 : i32
    %c0_i32_0 = arith.constant 0 : i32
    return %arg0, %c0_i32, %arg1 : i32, i32, i32
  }
}

</mosaic_0001>

<bundles_post_ra>
// kernel: tpu_custom_call.1
= control target key start
LH: loop header
LB: loop body
LE: loop exit
PB: predicated region body
PF: predicated region fallthrough
CT: control target
= control target key end

     0   :  { %s2508_s0 = inlined_call_operand.hbm [shape: f32[2,8,256], index: 0, kind: input, shape index: {}]   ;;  %s2509_s1 = inlined_call_operand.hbm [shape: f32[2,8,256], index: 1, kind: input, shape index: {}]   ;;  %s2510_s2 = inlined_call_operand.hbm [shape: f32[2,8,256], index: 2, kind: input, shape index: {}]   ;;  %s2511_s3 = inlined_call_operand.vmem [shape: f32[6,8,24], index: 3, kind: input, shape index: {}]   ;;  %s2512_s4 = inlined_call_operand.vmem [shape: f32[6,8,1], index: 4, kind: input, shape index: {}]   ;;  %s2513_s5 = inlined_call_operand.hbm [shape: f32[2,8,256], index: 5, kind: output, shape index: {}]  }
   0x1   :  { %2533 = sst [smem:[#allocation23_spill]] %s2509_s1 }
   0x2   :  { %2534 = sst [smem:[#allocation24_spill]] %s2511_s3 }
   0x3   :  { %2535 = sst [smem:[#allocation25_spill]] %s2512_s4 }
   0x4   :  { %2536 = sst [smem:[#allocation26_spill]] %s2513_s5 }
   0x5   :  { %10 = vsyncpa [#allocation5], 0 }
   0x6   :  { %12 = vsyncpa [#allocation5 + $0x1], 0 }
   0x7   :  { %13 = vsyncpa [#allocation8], 0 }
   0x8   :  { %15 = vsyncpa [#allocation8 + $0x1], 0 }
   0x9   :  { %16 = vsyncpa [#allocation6], 0 }
   0xa   :  { %18 = vsyncpa [#allocation6 + $0x1], 0  ;;  %s1901_s18 = smov 0   ;;  %s1903_s19 = smov 0  }
   0xb   :  { %s1905_s20 = smov 0   ;;  %s1907_s21 = smov 0  }
   0xc   :  { %s1909_s22 = smov 0   ;;  %s1911_s23 = smov 0  }
   0xd   :  { %s1913_s24 = smov 0   ;;  %s1915_s25 = smov 0  }
   0xe   :  { %s1917_s26 = smov 0   ;;  %s1919_s27 = smov 0  }
   0xf   :  { %s1921_s28 = smov 0   ;;  %s1923_s29 = smov 0  }
  0x10   :  { %s1925_s30 = smov 0   ;;  %s1927_s6 = smov 0  }
  0x11 LB: > { %2537 = sst [smem:[#allocation15_spill]] %s1813_s21  ;;  %s1972_s7 = sadd.s32 4294967295, %s1853_s6   ;;  %s1853_s6 = sphi %s1927_s6, %s24_s6   ;;  %s1849_s30 = sphi %s1925_s30, %s2599_s30   ;;  %s1845_s29 = sphi %s1923_s29, %s2587_s29   ;;  %s1841_s28 = sphi %s1921_s28, %s2598_s28   ;;  %s1837_s27 = sphi %s1919_s27, %s2586_s27   ;;  %s1833_s26 = sphi %s1917_s26, %s2597_s26   ;;  %s1829_s25 = sphi %s1915_s25, %s2596_s25   ;;  %s1825_s24 = sphi %s1913_s24, %s2595_s24   ;;  %s1821_s23 = sphi %s1911_s23, %s2594_s23   ;;  %s1817_s22 = sphi %s1909_s22, %s2593_s22   ;;  %s1813_s21 = sphi %s1907_s21, %s2592_s21   ;;  %s1809_s20 = sphi %s1905_s20, %s2591_s20   ;;  %s1805_s19 = sphi %s1903_s19, %s2590_s19   ;;  %s1801_s18 = sphi %s1901_s18, %s2589_s18  }
  0x12   : > { %2538 = sst [smem:[#allocation16_spill]] %s1837_s27  ;;  %s1372_s8 = sadd.s32 4294967294, %s1853_s6  }
  0x13   : > { %2539 = sst [smem:[#allocation17_spill]] %s1841_s28  ;;  %s33_s9 = sadd.s32 1, %s1845_s29 }
  0x14   : > { %2540 = sst [smem:[#allocation18_spill]] %s1845_s29  ;;  %s36_s10 = sadd.s32 1, %s1849_s30 }
  0x15   : > { %p34_p0 = scmp.ge.s32.totalorder %s33_s9, 2  ;;  %p2524_p1 = scmp.eq.s32.totalorder %s1853_s6, 0 }
  0x16   : > { %p2523_p2 = scmp.eq.s32.totalorder %s1972_s7, 0  ;;  %p86_p3 = scmp.ne.s32.totalorder %s1821_s23, %s1817_s22 }
  0x17   : > { %s2601_s9 = smov (%p34_p0, %s33_s9), 0  ;;  %s2603_s10 = smov (!%p34_p0, %s36_s10), %s1849_s30 }
  0x18   : > { %2541 = sst [smem:[#allocation19_spill]] %s2601_s9  ;;  %p92_p4 = scmp.ne.s32.totalorder %s1817_s22, %s1813_s21 }
  0x19   : > { %p194_p5 = scmp.eq.s32.totalorder %s1972_s7, 3  ;;  %p1994_p6 = por %p86_p3, %p2524_p1 }
  0x1a   : > { %p200_p7 = scmp.eq.s32.totalorder %s1372_s8, 3  ;;  %p2000_p8 = por %p92_p4, %p2523_p2 }
  0x1b   : > { %p2004_p9 = por %p194_p5, %p86_p3  ;;  %p2522_p11 = scmp.lt.s32.totalorder %s1853_s6, 4 }
  0x1c   : > { %s2543_s14 = scalar_select %p2000_p8, 1, 0 }
  0x1d   : > { %s2545_s15 = scalar_select %p2004_p9, 1, 0 }
  0x1e   : > { %2544 = sst [smem:[#allocation20_spill]] %s2543_s14  ;;  %p2008_p10 = por %p200_p7, %p92_p4 }
  0x1f   : > { %s1379_s17 = sshll.u32 %s1849_s30, 1  ;;  %s249_s11 = sand.u32 1, %s1853_s6  }
  0x20   : > { %s2546_s16 = scalar_select %p2008_p10, 1, 0 }
  0x21   : > { %s251_s12 = sand.u32 1, %s1821_s23   ;;  %s258_s21 = sadd.s32 %s1845_s29, %s1379_s17 }
  0x22   : > { %2547 = sst [smem:[#allocation21_spill]] %s2546_s16  ;;  %s1381_s8 = sshll.u32 %s251_s12, 3 }
  0x23   : > { %s1383_s5 = sshll.u32 %s258_s21, 7  ;;  %s253_s28 = scalar_lea.vmem [#allocation7], %s1381_s8 }
  0x24   : > { %s262_s3 = sshll.u32 %s253_s28, 4  ;;  %s2548_s1 = sld [smem:[#allocation23_spill]]  ;;  %s2022_s3 = int_to_ptr.vmem [resolvable:$true] %s262_s3 }
  0x25   : > { %p2028_p12 = pnand %p2522_p11, %p1994_p6  ;;  %s2034_s21 = scalar_lea.sflag [#allocation8], %s249_s11 }
  0x27   : > { %p1607_p4 = pneg %p2028_p12 }
  0x2a   : > { %s2020_s14 = scalar_lea.hbm %s2548_s1, %s1383_s5  ;;  %s1610_s28 = scalar_lea.hbm %s2548_s1, 512 }
  0x2b   : > { %s1605_s4 = scalar_lea.hbm %s2020_s14, 128  ;;  %p1611_p6 = scmp.lt.u32.totalorder %s2020_s14, %s2548_s1 }
  0x2c   : > { %p1606_p3 = scmp.ne.s32.totalorder %s2020_s14, %s1605_s4  ;;  %p1612_p11 = scmp.lt.u32.totalorder %s1610_s28, %s1605_s4 }
  0x2d   : > { %p1614_p1 = scmp.lt.u32.totalorder %s1605_s4, %s2020_s14 }
  0x2e   : > { %p1608_p5 = pnand %p1607_p4, %p1606_p3  ;;  %p1613_p2 = por %p1612_p11, %p1611_p6 }
  0x30   : > { %p1609_p7 = pneg %p1608_p5  ;;  %p1615_p13 = por %p1614_p1, %p1613_p2 }
  0x32   : > { %p1616_p0 = pnand %p1615_p13, %p1609_p7 }
  0x34   : > { %1619 = shalt.err (!%p1616_p0)
}
  0x35   : > { %s1620_s11 = scalar_lea.vmem %s2022_s3, 128  ;;  %s1855_s17 = smov [#allocation7]  }
  0x36   : > { %p1621_p3 = scmp.ne.s32.totalorder %s2022_s3, %s1620_s11  ;;  %s1625_s8 = sshll.u32 %s1855_s17, 4  ;;  %s1626_s8 = int_to_ptr.vmem [resolvable:$false] %s1625_s8 }
  0x37   : > { %s1627_s5 = scalar_lea.vmem %s1626_s8, 256  ;;  %p1628_p9 = scmp.lt.s32.totalorder %s2022_s3, %s1626_s8 }
  0x38   : > { %p1623_p5 = pnand %p1621_p3, %p1607_p4  ;;  %p1629_p11 = scmp.lt.s32.totalorder %s1627_s5, %s1620_s11 }
  0x3a   : > { %p1624_p10 = pneg %p1623_p5  ;;  %p1630_p6 = por %p1629_p11, %p1628_p9 }
  0x3c   : > { %p1631_p1 = pnand %p1630_p6, %p1624_p10 }
  0x3e   : > { %1634 = shalt.err (!%p1631_p1)
}
  0x3f   : > { %1463 = dma.hbm_to_vmem [thread:$0]  (!%p2028_p12), %s2020_s14, 128, %s2022_s3, %s2034_s21  }
  0x40   : > { %p2550_p2 = scmp.lt.s32.totalorder %s1853_s6, 5  ;;  %p2551_p9 = scmp.ge.s32.totalorder %s1853_s6, 1 }
  0x41   : > { %p38_p13 = scmp.ge.s32.totalorder %s2603_s10, 2  ;;  %s51_s27 = sadd.s32 1, %s1833_s26 }
  0x42   : > { %p2066_p10 = pnand %p2551_p9, %p2550_p2  ;;  %p58_p0 = scmp.ne.s32.totalorder %s1833_s26, %s1829_s25 }
  0x43   : > { %s2605_s10 = smov (%p38_p13, %s2603_s10), 0  ;;  %p64_p12 = scmp.ne.s32.totalorder %s1829_s25, %s1825_s24 }
  0x44   : > { %2553 = sst [smem:[#allocation22_spill]] %s2605_s10  ;;  %s2076_s4 = ssub.s32 %s1849_s30, %s2605_s10 }
  0x45   : > { %s2554_s3 = ssub.s32 %s1845_s29, %s2601_s9  ;;  %p2555_p4 = scmp.eq.s32.totalorder %s1853_s6, 0 }
  0x46   : > { %s76_s14 = sor.u32 %s2554_s3, %s2076_s4  ;;  %p2529_p3 = scmp.eq.s32.totalorder %s2076_s4, 0 }
  0x47   : > { %p2089_p7 = por %p2555_p4, %p58_p0  ;;  %p2557_p5 = scmp.eq.s32.totalorder %s1972_s7, 0 }
  0x48   : > { %p77_p6 = scmp.eq.s32.totalorder %s76_s14, 0  ;;  %s226_s13 = sand.u32 1, %s1833_s26  }
  0x49   : > { %p2096_p11 = por %p2557_p5, %p64_p12  ;;  %s2559_s24 = sadd.s32 1, %s1821_s23 }
  0x4a   : > { %s2104_s11 = scalar_select %p2529_p3, %s1833_s26, %s51_s27  }
  0x4b   : > { %s2558_s12 = scalar_select %p2096_p11, 1, 0 }
  0x4c   : > { %s2109_s17 = scalar_select %p77_p6, %s1821_s23, %s2559_s24  }
  0x4d   : > { %s1377_s8 = sshll.u32 %s226_s13, 3  ;;  %s1795_s5 = sshll.u32 %s1849_s30, 8 }
  0x4e   : > { %s230_s3 = scalar_lea.vmem [#allocation4], %s1377_s8  ;;  %s2117_s29 = scalar_lea.hbm %s2508_s0, %s1795_s5 }
  0x4f   : > { %s242_s1 = sshll.u32 %s230_s3, 4  ;;  %p2560_p1 = scmp.lt.s32.totalorder %s1853_s6, 4  ;;  %s2119_s1 = int_to_ptr.vmem [resolvable:$true] %s242_s1 }
  0x50   : > { %s227_s14 = scalar_lea.sflag [#allocation5], %s226_s13  ;;  %s1635_s24 = scalar_lea.hbm %s2117_s29, 128 }
  0x51   : > { %p2125_p2 = pnand %p2560_p1, %p2089_p7  ;;  %p1636_p9 = scmp.ne.s32.totalorder %s2117_s29, %s1635_s24 }
  0x52   : > { %s1640_s28 = scalar_lea.hbm %s2508_s0, 512  ;;  %p1641_p4 = scmp.lt.u32.totalorder %s2117_s29, %s2508_s0 }
  0x53   : > { %p1637_p13 = pneg %p2125_p2  ;;  %p1642_p7 = scmp.lt.u32.totalorder %s1640_s28, %s1635_s24 }
  0x54   : > { %p1644_p6 = scmp.lt.u32.totalorder %s1635_s24, %s2117_s29 }
  0x55   : > { %p1638_p0 = pnand %p1637_p13, %p1636_p9  ;;  %p1643_p5 = por %p1642_p7, %p1641_p4 }
  0x57   : > { %p1639_p12 = pneg %p1638_p0  ;;  %p1645_p1 = por %p1644_p6, %p1643_p5 }
  0x59   : > { %p1646_p3 = pnand %p1645_p1, %p1639_p12 }
  0x5b   : > { %1649 = shalt.err (!%p1646_p3)
}
  0x5c   : > { %s1650_s13 = scalar_lea.vmem %s2119_s1, 128  ;;  %s1856_s9 = smov [#allocation4]  }
  0x5d   : > { %p1651_p9 = scmp.ne.s32.totalorder %s2119_s1, %s1650_s13  ;;  %s1655_s10 = sshll.u32 %s1856_s9, 4  ;;  %s1656_s10 = int_to_ptr.vmem [resolvable:$false] %s1655_s10 }
  0x5e   : > { %s1657_s8 = scalar_lea.vmem %s1656_s10, 256  ;;  %p1658_p11 = scmp.lt.s32.totalorder %s2119_s1, %s1656_s10 }
  0x5f   : > { %p1653_p0 = pnand %p1651_p9, %p1637_p13  ;;  %p1659_p4 = scmp.lt.s32.totalorder %s1657_s8, %s1650_s13 }
  0x61   : > { %p1654_p8 = pneg %p1653_p0  ;;  %p1660_p7 = por %p1659_p4, %p1658_p11 }
  0x63   : > { %p1661_p5 = pnand %p1660_p7, %p1654_p8 }
  0x65   : > { %1664 = shalt.err (!%p1661_p5)
}
  0x66   : > { %1460 = dma.hbm_to_vmem [thread:$0]  (!%p2125_p2), %s2117_s29, 128, %s2119_s1, %s227_s14  }
  0x67   : > { %s113_s24 = sadd.s32 1, %s1809_s20  ;;  %p120_p8 = scmp.ne.s32.totalorder %s1809_s20, %s1805_s19 }
  0x68   : > { %p126_p3 = scmp.ne.s32.totalorder %s1805_s19, %s1801_s18  ;;  %s271_s28 = sand.u32 1, %s1809_s20  }
  0x69   : > { %p2562_p11 = scmp.eq.s32.totalorder %s1853_s6, 0  ;;  %p2563_p12 = scmp.eq.s32.totalorder %s1972_s7, 0 }
  0x6a   : > { %s1384_s3 = sshll.u32 %s271_s28, 3  ;;  %p2565_p1 = scmp.eq.s32.totalorder %s2076_s4, 0 }
  0x6b   : > { %p122_p13 = por %p120_p8, %p2562_p11  ;;  %p2164_p6 = por %p126_p3, %p2563_p12 }
  0x6c   : > { %s2171_s13 = scalar_select %p2565_p1, %s1809_s20, %s113_s24  }
  0x6d   : > { %s2564_s27 = scalar_select %p2164_p6, 1, 0 }
  0x6e   : > { %s1797_s9 = sadd.s32 128, %s1795_s5  ;;  %s273_s18 = scalar_lea.vmem [#allocation9], %s1384_s3 }
  0x6f   : > { %s2178_s1 = scalar_lea.hbm %s2510_s2, %s1797_s9  ;;  %s285_s29 = sshll.u32 %s273_s18, 4  ;;  %s2180_s29 = int_to_ptr.vmem [resolvable:$true] %s285_s29 }
  0x70   : > { %p2566_p2 = scmp.lt.s32.totalorder %s1853_s6, 4  ;;  %s1665_s5 = scalar_lea.hbm %s2178_s1, 128 }
  0x71   : > { %p1666_p0 = scmp.ne.s32.totalorder %s2178_s1, %s1665_s5  ;;  %s1670_s28 = scalar_lea.hbm %s2510_s2, 512 }
  0x72   : > { %p2184_p9 = pnand %p2566_p2, %p122_p13  ;;  %p1671_p8 = scmp.lt.u32.totalorder %s2178_s1, %s2510_s2 }
  0x73   : > { %p1672_p3 = scmp.lt.u32.totalorder %s1670_s28, %s1665_s5  ;;  %p1674_p13 = scmp.lt.u32.totalorder %s1665_s5, %s2178_s1 }
  0x74   : > { %p1667_p4 = pneg %p2184_p9 }
  0x75   : > { %p1673_p11 = por %p1672_p3, %p1671_p8 }
  0x76   : > { %p1668_p7 = pnand %p1667_p4, %p1666_p0 }
  0x77   : > { %p1675_p12 = por %p1674_p13, %p1673_p11 }
  0x78   : > { %p1669_p5 = pneg %p1668_p7 }
  0x7a   : > { %p1676_p1 = pnand %p1675_p12, %p1669_p5 }
  0x7c   : > { %1679 = shalt.err (!%p1676_p1)
}
  0x7d   : > { %s1680_s10 = scalar_lea.vmem %s2180_s29, 128  ;;  %s1857_s8 = smov [#allocation9]  }
  0x7e   : > { %p1681_p2 = scmp.ne.s32.totalorder %s2180_s29, %s1680_s10  ;;  %s1685_s18 = sshll.u32 %s1857_s8, 4  ;;  %s1686_s18 = int_to_ptr.vmem [resolvable:$false] %s1685_s18 }
  0x7f   : > { %s1687_s14 = scalar_lea.vmem %s1686_s18, 256  ;;  %p1688_p6 = scmp.lt.s32.totalorder %s2180_s29, %s1686_s18 }
  0x80   : > { %p1683_p0 = pnand %p1681_p2, %p1667_p4  ;;  %p1689_p8 = scmp.lt.s32.totalorder %s1687_s14, %s1680_s10 }
  0x82   : > { %p1684_p7 = pneg %p1683_p0  ;;  %p1690_p3 = por %p1689_p8, %p1688_p6 }
  0x84   : > { %p1691_p11 = pnand %p1690_p3, %p1684_p7 }
  0x86   : > { %1694 = shalt.err (!%p1691_p11)
}
  0x87   : > { %1466 = dma.hbm_to_vmem [thread:$0]  (!%p2184_p9), %s2178_s1, 128, %s2180_s29, %s2034_s21  }
  0x88   : > { %294 = sbr.rel (%p2066_p10) target bundleno = 2409 (0x969), region = 40  ;;  %s296_s5 = sand.u32 (!%p2066_p10), 1, %s1829_s25  }
  0x89   : > { %s1388_s24 = sshll.u32 (!%p2066_p10), %s296_s5, 3  ;;  %s297_s28 = scalar_lea.sflag (!%p2066_p10), [#allocation5], %s296_s5 }
  0x8a   : > { %s300_s3 = scalar_lea.vmem (!%p2066_p10), [#allocation4], %s1388_s24  ;;  %p2568_p4 = scmp.ne.s32.totalorder (!%p2066_p10), %s2558_s12, 0 }
  0x8f   : > { %1780 = dma.done.wait (%p2568_p4), %s297_s28, 128  }
  0x90   : > { %1782 = vsyncadd (%p2568_p4), %s297_s28, 4294967168  ;;  %s2569_s4 = sld [smem:[#allocation20_spill]]  ;;  %s305_s9 = sand.u32 1, %s1972_s7  }
  0x91   : > { %s307_s21 = sand.u32 1, %s1817_s22   ;;  %s306_s1 = scalar_lea.sflag [#allocation8], %s305_s9 }
  0x92   : > { %s2225_s16 = sshll.u32 %s307_s21, 3 }
  0x93   : > { %s309_s29 = scalar_lea.vmem [#allocation7], %s2225_s16 }
  0x96   : > { %p2570_p10 = scmp.ne.s32.totalorder %s2569_s4, 0 }
  0x98   : > { %1784 = dma.done.wait (%p2570_p10), %s306_s1, 128  }
  0x99   : > { %1786 = vsyncadd (%p2570_p10), %s306_s1, 4294967168  ;;  %s316_s12 = sand.u32 1, %s1805_s19   ;;  %p2571_p6 = scmp.ne.s32.totalorder %s2564_s27, 0 }
  0x9a   : > { %s1390_s10 = sshll.u32 %s316_s12, 3 }
  0x9b   : > { %s318_s8 = scalar_lea.vmem [#allocation9], %s1390_s10 }
  0x9c   : > { %1788 = dma.done.wait (%p2571_p6), %s306_s1, 128  }
  0x9d   : > { %1790 = vsyncadd (%p2571_p6), %s306_s1, 4294967168  ;;  %s2572_s7 = sld [smem:[#allocation16_spill]]  ;;  %s1858_s28 = smov 12   ;;  %v373_v2 = vld [vmem:[%s309_s29] sm:$0xff]  ;;  %vm371_vm0 = vcmask 97280   ;;  %vm378_vm1 = vcmask 1047648   ;;  %v514_v27 = vlaneseq }
  0x9e   : > { %vm391_vm2 = vcmask 195680   ;;  %vm402_vm5 = vcmask 179200   ;;  %s1859_s27 = smov 127   ;;  %v1860_v12 = vmov 0.0   ;;  %v1862_v13 = vmov 0   ;;  %s2573_s1 = sld [smem:[#allocation25_spill]] }
  0x9f   : > { %507 = vmatprep.mubr.f32.mxu0 %v1860_v12  ;;  %646 = vmatprep.mubr.f32.mxu1 %v1860_v12  ;;  %vm410_vm6 = vcmask 1039360   ;;  %vm420_vm7 = vcmask 1031168   ;;  %s2574_s10 = sld [smem:[#allocation24_spill]]  ;;  %vm439_vm8 = vcmask 195584   ;;  %v2274_v28 = vand.u32 127, %v514_v27  ;;  %s1866_s4 = smov 123  }
  0xa0   : > { %1597 = vset.pattern.permute.xlu1 %v1862_v13  ;;  %1598 = vset.pattern.permute.xlu0 %v1862_v13  ;;  %s1867_s9 = smov 118   ;;  %s354_s29 = scalar_lea.vmem [#allocation10], %s2225_s16 }
  0xa1   : > { %v2277_v29 = vadd.s32 128, %v2274_v28  ;;  %v517_v30 = vadd.s32 4294967285, %v2274_v28  ;;  %v653_v60 = vadd.s32 4294967286, %v2274_v28  ;;  %s1239_s12 = sshll.u32 %s354_s29, 4  ;;  %s1224_s16 = scalar_lea.sflag [#allocation6], %s307_s21  ;;  %s2431_s12 = int_to_ptr.vmem [resolvable:$true] %s1239_s12 }
  0xa2   : > { %p2581_p12 = scmp.ne.s32.totalorder %s2545_s15, 0 }
  0xa3   : > { %p362_p9 = scmp.gt.s32.totalorder %s2572_s7, 0  ;;  %p382_p5 = scmp.lt.s32.totalorder %s2572_s7, 1  ;;  %v518_v32 = vadd.s32 4294967285, %v2277_v29  ;;  %vm519_vm10 = vcmp.ge.s32.totalorder %v517_v30, 0  ;;  %v654_v62 = vadd.s32 4294967286, %v2277_v29  ;;  %v802_v30 = vadd.s32 4294967289, %v2274_v28 }
  0xa4   : > { %v433_v14 = vld [vmem:[%s2573_s1] sm:$0xff]  ;;  %v1394_v47 = vld [vmem:[%s2573_s1 + $0x8] sm:$0xff] }
  0xa5   : > { %s2239_s18 = scalar_select %p362_p9, 1, 0  ;;  %v432_v25 = vld [vmem:[%s2574_s10] sm:$0xff]  ;;  %vm524_vm12 = vcmp.lt.s32.totalorder %v518_v32, 128  ;;  %v1393_v58 = vld [vmem:[%s2574_s10 + $0x8] sm:$0xff] }
  0xa6   : > { %s2241_s14 = scalar_select %p382_p5, 1, 0  ;;  %v1406_v35 = vld [vmem:[%s2573_s1 + $0x28] sm:$0xff] }
  0xa7   : > { %s1600_s5 = scalar_select %p362_p9, 255, 0  ;;  %v364_v31 = vstv %s2239_s18 }
  0xa8   : > { %s1603_s24 = scalar_select %p382_p5, 255, 0  ;;  %v384_v33 = vstv %s2241_s14  ;;  %vm2283_vm9 = vcmp.eq.s32.totalorder %v364_v31, 1  ;;  %v803_v31 = vadd.s32 4294967289, %v2277_v29 }
  0xa9   : > { %v1601_v0 = vld [vmem:[%s300_s3] sm:%s1600_s5]  ;;  %s1861_s3 = smov 126   ;;  %vm2287_vm11 = vcmp.eq.s32.totalorder %v384_v33, 1  ;;  %vm521_vm13 = vmor %vm519_vm10, %vm2283_vm9  ;;  %s1865_s14 = smov 124  }
  0xaa   : > { %368 = vrot.lane.b32.xlu0 %v1601_v0, %s1858_s28  ;;  %v1604_v1 = vld [vmem:[%s318_s8] sm:%s1603_s24]  ;;  %vm526_vm14 = vmor %vm524_vm12, %vm2287_vm11  ;;  %s1863_s24 = smov 125  }
  0xab   : > { %388 = vrot.lane.b32.xlu1 %v1604_v1, %s1858_s28 }
  0xae   : > { %375 = vrot.lane.b32.xlu0 %v373_v2, %s1858_s28  ;;  %s1864_s28 = smov 122  }
 0x11c   : > { %v369_v3 = vpop.permute.xlu0 %368 }
 0x11d   : > { %372 = vst.msk [vmem:[#allocation2] sm:$0xff] %vm371_vm0, %v369_v3  ;;  %v389_v4 = vpop.permute.xlu1 %388 }
 0x120   : > { %v376_v5 = vpop.permute.xlu0 %375 }
 0x121   : > { %379 = vst.msk [vmem:[#allocation2] sm:$0xff] %vm378_vm1, %v376_v5 }
 0x122   : > { %380 = vst.msk [vmem:[#allocation2 + $0x8] sm:$0xff] %vm371_vm0, %v376_v5 }
 0x123   : > { %392 = vst.msk [vmem:[#allocation2 + $0x8] sm:$0xff] %vm391_vm2, %v389_v4  ;;  %vm542_vm2 = vcmask 162816  }
 0x128   : > { %v2245_v6 = vld [vmem:[#allocation2] sm:$0xff] }
 0x129   : > { %vm395_vm3 = vcmp.gt.f32.partialorder %v2245_v6, 0.0  ;;  %v397_v7 = vmul.f32 0.2, %v2245_v6 }
 0x12a   : > { %v2249_v8 = vld [vmem:[#allocation2 + $0x8] sm:$0xff] }
 0x12b   : > { %vm396_vm4 = vcmp.gt.f32.partialorder %v2249_v8, 0.0  ;;  %v398_v9 = vmul.f32 0.2, %v2249_v8  ;;  %v399_v10 = vsel %vm395_vm3, %v2245_v6, %v397_v7  ;;  %vm655_vm3 = vcmp.ge.s32.totalorder %v653_v60, 0 }
 0x12c   : > { %406 = vrot.lane.b32.xlu1 %v399_v10, %s1859_s27  ;;  %v938_v60 = vadd.s32 4294967290, %v2277_v29 }
 0x12d   : > { %v400_v11 = vsel %vm396_vm4, %v2249_v8, %v398_v9  ;;  %vm660_vm4 = vcmp.lt.s32.totalorder %v654_v62, 128 }
 0x12e   : > { %408 = vrot.lane.b32.xlu0 %v400_v11, %s1859_s27  ;;  %403 = vst.msk [vmem:[#allocation3 + $0x8] sm:$0xff] %vm402_vm5, %v400_v11  ;;  %vm662_vm10 = vmor %vm660_vm4, %vm2287_vm11 }
 0x130   : > { %416 = vrot.lane.b32.xlu1 %v399_v10, %s1861_s3 }
 0x132   : > { %418 = vrot.lane.b32.xlu0 %v400_v11, %s1861_s3 }
 0x134   : > { %436 = vperm.xlu1 %1597, %v433_v14  }
 0x135   : > { %v427_v19 = vld [vmem:[#allocation3 + $0x8] sm:$0xff] }
 0x19e   : > { %v407_v16 = vpop.permute.xlu1 %406 }
 0x1a0   : > { %v409_v15 = vpop.permute.xlu0 %408 }
 0x1a1   : > { %415 = vst.msk [vmem:[#allocation3 + $0x18] sm:$0xff] %vm402_vm5, %v409_v15  ;;  %v411_v18 = vsel %vm410_vm6, %v407_v16, %v409_v15  ;;  %v1397_v15 = vld [vmem:[%s2573_s1 + $0x10] sm:$0xff] }
 0x1a2   : > { %v1428_v22 = vpack.c.bf16 %v411_v18, %v399_v10  ;;  %v417_v23 = vpop.permute.xlu1 %416 }
 0x1a4   : > { %v419_v17 = vpop.permute.xlu0 %418 }
 0x1a5   : > { %425 = vst.msk [vmem:[#allocation3 + $0x28] sm:$0xff] %vm402_vm5, %v419_v17  ;;  %v421_v26 = vsel %vm420_vm7, %v417_v23, %v419_v17  ;;  %vm657_vm5 = vmor %vm655_vm3, %vm2283_vm9  ;;  %vm809_vm3 = vcmp.lt.s32.totalorder %v803_v31, 128 }
 0x1a8   : > { %v429_v20 = vld [vmem:[#allocation3 + $0x18] sm:$0xff] }
 0x1a9   : > { %v1426_v21 = vpack.c.bf16 %v429_v20, %v427_v19 }
 0x1ab   : > { %1427 = vmatprep.subr.bf16.mxu0 %v1426_v21 }
 0x1ac   : > { %1429 = vmatpush1.bf16.msra.mxu0 %v1428_v22  ;;  %v431_v24 = vld [vmem:[#allocation3 + $0x28] sm:$0xff] }
 0x1ad   : > { %447 = vmatprep.subr.mxu0 %v431_v24 }
 0x1b0   : > { %448 = vmatpush1.msra.mxu0 %v421_v26  ;;  %v1396_v26 = vld [vmem:[%s2574_s10 + $0x10] sm:$0xff] }
 0x1b1   : > { %1392 = vmatmul.mubr.msk.f32.vlgmr.msra.gmra.mrb[0].mxu0 %vm439_vm8, %v432_v25 }
 0x1b2   : > { %795 = vmatprep.mubr.f32.mxu0 %v1860_v12 }
 0x1b3   : > { %v437_v36 = vpop.permute.xlu1 %436 }
 0x284   : > { %v509_v37 = vpop.f32.mrb[0].mxu0 }
 0x285   : > { %v510_v38 = vadd.f32 %v509_v37, %v437_v36  ;;  %v511_v39 = vpop.f32.mrb[1].mxu0 }
 0x286   : > { %v512_v40 = vadd.f32 %v511_v39, %v437_v36 }
 0x287   : > { %v533_v41 = vsel %vm521_vm13, %v510_v38, 0.0 }
 0x288   : > { %v537_v42 = vmul.f32 0.2, %v533_v41  ;;  %v534_v43 = vsel %vm526_vm14, %v512_v40, 0.0  ;;  %vm535_vm15 = vcmp.gt.f32.partialorder %v533_v41, 0.0  ;;  %vm689_vm14 = vcmask 113664  }
 0x289   : > { %v538_v44 = vmul.f32 0.2, %v534_v43  ;;  %vm536_vm1 = vcmp.gt.f32.partialorder %v534_v43, 0.0 }
 0x28a   : > { %v539_v45 = vsel %vm535_vm15, %v533_v41, %v537_v42  ;;  %vm697_vm15 = vcmask 1022976  }
 0x28b   : > { %546 = vrot.lane.b32.xlu0 %v539_v45, %s1859_s27  ;;  %v540_v46 = vsel %vm536_vm1, %v534_v43, %v538_v44  ;;  %vm707_vm1 = vcmask 998400  }
 0x28c   : > { %548 = vrot.lane.b32.xlu1 %v540_v46, %s1859_s27  ;;  %543 = vst.msk [vmem:[#allocation3 + $0x8] sm:$0xff] %vm542_vm2, %v540_v46 }
 0x28f   : > { %555 = vrot.lane.b32.xlu0 %v539_v45, %s1861_s3 }
 0x290   : > { %557 = vrot.lane.b32.xlu1 %v540_v46, %s1861_s3 }
 0x293   : > { %576 = vperm.xlu0 %1598, %v1394_v47   ;;  %v565_v52 = vld [vmem:[#allocation3 + $0x8] sm:$0xff] }
 0x294   : > { %673 = vrot.lane.b32.xlu1 %v2245_v6, %s1861_s3 }
 0x298   : > { %675 = vrot.lane.b32.xlu1 %v2249_v8, %s1861_s3 }
 0x2fd   : > { %v547_v49 = vpop.permute.xlu0 %546 }
 0x2fe   : > { %v549_v48 = vpop.permute.xlu1 %548 }
 0x2ff   : > { %554 = vst.msk [vmem:[#allocation3 + $0x18] sm:$0xff] %vm542_vm2, %v549_v48  ;;  %v550_v51 = vsel %vm410_vm6, %v547_v49, %v549_v48 }
 0x300   : > { %v1432_v55 = vpack.c.bf16 %v550_v51, %v539_v45  ;;  %v1400_v45 = vld [vmem:[%s2573_s1 + $0x18] sm:$0xff] }
 0x301   : > { %v556_v56 = vpop.permute.xlu0 %555 }
 0x302   : > { %v558_v50 = vpop.permute.xlu1 %557 }
 0x303   : > { %563 = vst.msk [vmem:[#allocation3 + $0x28] sm:$0xff] %vm542_vm2, %v558_v50  ;;  %v559_v59 = vsel %vm420_vm7, %v556_v56, %v558_v50  ;;  %vm804_vm2 = vcmp.ge.s32.totalorder %v802_v30, 0  ;;  %v1399_v56 = vld [vmem:[%s2574_s10 + $0x18] sm:$0xff]  ;;  %v1868_v30 = vmov 0.0|0.0  }
 0x304   : > { %vm806_vm4 = vmor %vm804_vm2, %vm2283_vm9 }
 0x306   : > { %v567_v53 = vld [vmem:[#allocation3 + $0x18] sm:$0xff]  ;;  %v674_v61 = vpop.permute.xlu1 %673 }
 0x307   : > { %v1430_v54 = vpack.c.bf16 %v567_v53, %v565_v52 }
 0x309   : > { %1431 = vmatprep.subr.bf16.mxu1 %v1430_v54 }
 0x30a   : > { %1433 = vmatpush1.bf16.msra.mxu1 %v1432_v55  ;;  %v569_v57 = vld [vmem:[#allocation3 + $0x28] sm:$0xff]  ;;  %v676_v0 = vpop.permute.xlu1 %675 }
 0x30b   : > { %586 = vmatprep.subr.mxu1 %v569_v57  ;;  %v677_v5 = vsel %vm420_vm7, %v674_v61, %v676_v0 }
 0x30e   : > { %587 = vmatpush1.msra.mxu1 %v559_v59 }
 0x30f   : > { %1395 = vmatmul.mubr.msk.f32.vlgmr.msra.gmra.mrb[0].mxu1 %vm439_vm8, %v1393_v58  ;;  %v937_v58 = vadd.s32 4294967290, %v2274_v28 }
 0x310   : > { %930 = vmatprep.mubr.f32.mxu1 %v1860_v12 }
 0x312   : > { %v577_v63 = vpop.permute.xlu0 %576 }
 0x3e2   : > { %v648_v1 = vpop.f32.mrb[0].mxu1 }
 0x3e3   : > { %v649_v2 = vadd.f32 %v648_v1, %v577_v63  ;;  %v650_v3 = vpop.f32.mrb[1].mxu1 }
 0x3e4   : > { %v651_v4 = vadd.f32 %v650_v3, %v577_v63 }
 0x3e5   : > { %v669_v6 = vsel %vm657_vm5, %v649_v2, 0.0  ;;  %vm811_vm5 = vmor %vm809_vm3, %vm2287_vm11 }
 0x3e6   : > { %v2323_v7 = vadd.f32 %v677_v5, %v669_v6  ;;  %v670_v8 = vsel %vm662_vm10, %v651_v4, 0.0 }
 0x3e7   : > { %v2325_v9 = vadd.f32 %v676_v0, %v670_v8 }
 0x3e8   : > { %vm682_vm12 = vcmp.gt.f32.partialorder %v2323_v7, 0.0  ;;  %v684_v10 = vmul.f32 0.2, %v2323_v7 }
 0x3e9   : > { %vm683_vm13 = vcmp.gt.f32.partialorder %v2325_v9, 0.0  ;;  %v685_v11 = vmul.f32 0.2, %v2325_v9 }
 0x3ea   : > { %v686_v13 = vsel %vm682_vm12, %v2323_v7, %v684_v10 }
 0x3eb   : > { %693 = vrot.lane.b32.xlu0 %v686_v13, %s1863_s24  ;;  %v687_v14 = vsel %vm683_vm13, %v2325_v9, %v685_v11  ;;  %vm944_vm13 = vcmp.lt.s32.totalorder %v938_v60, 128 }
 0x3ec   : > { %695 = vrot.lane.b32.xlu1 %v687_v14, %s1863_s24  ;;  %690 = vst.msk [vmem:[#allocation3 + $0x8] sm:$0xff] %vm689_vm14, %v687_v14  ;;  %vm946_vm2 = vmor %vm944_vm13, %vm2287_vm11  ;;  %s2579_s24 = sld [smem:[#allocation17_spill]] }
 0x3ef   : > { %703 = vrot.lane.b32.xlu0 %v686_v13, %s1864_s28 }
 0x3f0   : > { %705 = vrot.lane.b32.xlu1 %v687_v14, %s1864_s28 }
 0x3f3   : > { %725 = vperm.xlu0 %1598, %v1397_v15   ;;  %v714_v20 = vld [vmem:[#allocation3 + $0x8] sm:$0xff] }
 0x45d   : > { %v694_v17 = vpop.permute.xlu0 %693 }
 0x45e   : > { %v696_v16 = vpop.permute.xlu1 %695 }
 0x45f   : > { %702 = vst.msk [vmem:[#allocation3 + $0x18] sm:$0xff] %vm689_vm14, %v696_v16  ;;  %v698_v19 = vsel %vm697_vm15, %v694_v17, %v696_v16 }
 0x460   : > { %v1436_v23 = vpack.c.bf16 %v698_v19, %v686_v13  ;;  %v1403_v13 = vld [vmem:[%s2573_s1 + $0x20] sm:$0xff] }
 0x461   : > { %v704_v24 = vpop.permute.xlu0 %703 }
 0x462   : > { %v706_v18 = vpop.permute.xlu1 %705 }
 0x463   : > { %712 = vst.msk [vmem:[#allocation3 + $0x28] sm:$0xff] %vm689_vm14, %v706_v18  ;;  %v708_v27 = vsel %vm707_vm1, %v704_v24, %v706_v18  ;;  %vm961_vm14 = vcmask 1014784   ;;  %v1402_v24 = vld [vmem:[%s2574_s10 + $0x20] sm:$0xff] }
 0x466   : > { %v716_v21 = vld [vmem:[#allocation3 + $0x18] sm:$0xff] }
 0x467   : > { %v1434_v22 = vpack.c.bf16 %v716_v21, %v714_v20 }
 0x469   : > { %1435 = vmatprep.subr.bf16.mxu0 %v1434_v22 }
 0x46a   : > { %1437 = vmatpush1.bf16.msra.mxu0 %v1436_v23  ;;  %v718_v25 = vld [vmem:[#allocation3 + $0x28] sm:$0xff] }
 0x46b   : > { %735 = vmatprep.subr.mxu0 %v718_v25 }
 0x46e   : > { %736 = vmatpush1.msra.mxu0 %v708_v27  ;;  %v1088_v27 = vadd.s32 4294967295, %v2277_v29 }
 0x46f   : > { %1398 = vmatmul.mubr.msk.f32.vlgmr.msra.gmra.mrb[2].mxu0 %vm439_vm8, %v1396_v26  ;;  %v1087_v26 = vadd.s32 4294967295, %v2274_v28 }
 0x470   : > { %1080 = vmatprep.mubr.f32.mxu0 %v1860_v12  ;;  %vm1094_vm13 = vcmp.lt.s32.totalorder %v1088_v27, 128 }
 0x472   : > { %v726_v32 = vpop.permute.xlu0 %725 }
 0x542   : > { %v797_v33 = vpop.f32.mrb[2].mxu0 }
 0x543   : > { %v798_v36 = vadd.f32 %v797_v33, %v726_v32  ;;  %v799_v37 = vpop.f32.mrb[3].mxu0 }
 0x544   : > { %v800_v38 = vadd.f32 %v799_v37, %v726_v32 }
 0x545   : > { %v818_v39 = vsel %vm806_vm4, %v798_v36, 0.0 }
 0x546   : > { %v822_v40 = vmul.f32 0.2, %v818_v39  ;;  %v819_v41 = vsel %vm811_vm5, %v800_v38, 0.0  ;;  %vm820_vm10 = vcmp.gt.f32.partialorder %v818_v39, 0.0  ;;  %vm974_vm5 = vcmask 15360  }
 0x547   : > { %v823_v42 = vmul.f32 0.2, %v819_v41  ;;  %vm821_vm12 = vcmp.gt.f32.partialorder %v819_v41, 0.0 }
 0x548   : > { %v824_v43 = vsel %vm820_vm10, %v818_v39, %v822_v40  ;;  %vm982_vm10 = vcmask 1006592  }
 0x549   : > { %830 = vrot.lane.b32.xlu1 %v824_v43, %s1859_s27  ;;  %v825_v44 = vsel %vm821_vm12, %v819_v41, %v823_v42  ;;  %vm992_vm12 = vcmask 965632  }
 0x54a   : > { %832 = vrot.lane.b32.xlu0 %v825_v44, %s1859_s27  ;;  %827 = vst.msk [vmem:[#allocation3 + $0x8] sm:$0xff] %vm371_vm0, %v825_v44 }
 0x54d   : > { %839 = vrot.lane.b32.xlu1 %v824_v43, %s1861_s3 }
 0x54e   : > { %841 = vrot.lane.b32.xlu0 %v825_v44, %s1861_s3 }
 0x551   : > { %860 = vperm.xlu1 %1597, %v1400_v45   ;;  %v849_v50 = vld [vmem:[#allocation3 + $0x8] sm:$0xff] }
 0x552   : > { %957 = vrot.lane.b32.xlu0 %v2323_v7, %s1865_s14 }
 0x555   : > { %959 = vrot.lane.b32.xlu1 %v2325_v9, %s1865_s14  ;;  %s2580_s14 = sld [smem:[#allocation26_spill]] }
 0x5bb   : > { %v831_v47 = vpop.permute.xlu1 %830 }
 0x5bc   : > { %v833_v46 = vpop.permute.xlu0 %832 }
 0x5bd   : > { %838 = vst.msk [vmem:[#allocation3 + $0x18] sm:$0xff] %vm371_vm0, %v833_v46  ;;  %v834_v49 = vsel %vm410_vm6, %v831_v47, %v833_v46 }
 0x5be   : > { %v1440_v53 = vpack.c.bf16 %v834_v49, %v824_v43 }
 0x5bf   : > { %v840_v54 = vpop.permute.xlu1 %839 }
 0x5c0   : > { %v842_v48 = vpop.permute.xlu0 %841 }
 0x5c1   : > { %847 = vst.msk [vmem:[#allocation3 + $0x28] sm:$0xff] %vm371_vm0, %v842_v48  ;;  %v843_v57 = vsel %vm420_vm7, %v840_v54, %v842_v48  ;;  %vm939_vm0 = vcmp.ge.s32.totalorder %v937_v58, 0  ;;  %v1405_v48 = vld [vmem:[%s2574_s10 + $0x28] sm:$0xff] }
 0x5c2   : > { %vm941_vm15 = vmor %vm939_vm0, %vm2283_vm9  ;;  %vm1089_vm0 = vcmp.ge.s32.totalorder %v1087_v26, 0 }
 0x5c4   : > { %v851_v51 = vld [vmem:[#allocation3 + $0x18] sm:$0xff]  ;;  %v958_v1 = vpop.permute.xlu0 %957 }
 0x5c5   : > { %v1438_v52 = vpack.c.bf16 %v851_v51, %v849_v50 }
 0x5c7   : > { %1439 = vmatprep.subr.bf16.mxu1 %v1438_v52 }
 0x5c8   : > { %1441 = vmatpush1.bf16.msra.mxu1 %v1440_v53  ;;  %v853_v55 = vld [vmem:[#allocation3 + $0x28] sm:$0xff] }
 0x5c9   : > { %870 = vmatprep.subr.mxu1 %v853_v55 }
 0x5cc   : > { %871 = vmatpush1.msra.mxu1 %v843_v57 }
 0x5cd   : > { %1401 = vmatmul.mubr.msk.f32.vlgmr.msra.gmra.mrb[2].mxu1 %vm439_vm8, %v1399_v56  ;;  %1446 = vmatprep.subr.bf16.mxu1 %v1868_v30 }
 0x5d0   : > { %v861_v59 = vpop.permute.xlu1 %860 }
 0x5d4   : > { %v960_v61 = vpop.permute.xlu1 %959 }
 0x5d5   : > { %v962_v3 = vsel %vm961_vm14, %v958_v1, %v960_v61  ;;  %vm1091_vm14 = vmor %vm1089_vm0, %vm2283_vm9 }
 0x6a0   : > { %v932_v62 = vpop.f32.mrb[2].mxu1 }
 0x6a1   : > { %v933_v63 = vadd.f32 %v932_v62, %v861_v59  ;;  %v934_v0 = vpop.f32.mrb[3].mxu1 }
 0x6a2   : > { %v935_v2 = vadd.f32 %v934_v0, %v861_v59 }
 0x6a3   : > { %v953_v4 = vsel %vm941_vm15, %v933_v63, 0.0  ;;  %vm1096_vm15 = vmor %vm1094_vm13, %vm2287_vm11 }
 0x6a4   : > { %v2377_v5 = vadd.f32 %v962_v3, %v953_v4  ;;  %v954_v6 = vsel %vm946_vm2, %v935_v2, 0.0  ;;  %vm1869_vm2 = vmmov 0  }
 0x6a5   : > { %v2379_v7 = vadd.f32 %v960_v61, %v954_v6  ;;  %1423 = vmatprep.mubr.msk.f32.mxu1 %vm1869_vm2, %v1860_v12 }
 0x6a6   : > { %vm967_vm3 = vcmp.gt.f32.partialorder %v2377_v5, 0.0  ;;  %v969_v8 = vmul.f32 0.2, %v2377_v5 }
 0x6a7   : > { %vm968_vm4 = vcmp.gt.f32.partialorder %v2379_v7, 0.0  ;;  %v970_v9 = vmul.f32 0.2, %v2379_v7 }
 0x6a8   : > { %v971_v10 = vsel %vm967_vm3, %v2377_v5, %v969_v8 }
 0x6a9   : > { %978 = vrot.lane.b32.xlu0 %v971_v10, %s1866_s4  ;;  %v972_v11 = vsel %vm968_vm4, %v2379_v7, %v970_v9 }
 0x6aa   : > { %980 = vrot.lane.b32.xlu1 %v972_v11, %s1866_s4  ;;  %975 = vst.msk [vmem:[#allocation3 + $0x8] sm:$0xff] %vm974_vm5, %v972_v11 }
 0x6ad   : > { %988 = vrot.lane.b32.xlu0 %v971_v10, %s1867_s9 }
 0x6ae   : > { %990 = vrot.lane.b32.xlu1 %v972_v11, %s1867_s9 }
 0x6b1   : > { %1010 = vperm.xlu0 %1598, %v1403_v13   ;;  %v999_v18 = vld [vmem:[#allocation3 + $0x8] sm:$0xff] }
 0x71b   : > { %v979_v15 = vpop.permute.xlu0 %978 }
 0x71c   : > { %v981_v14 = vpop.permute.xlu1 %980 }
 0x71d   : > { %987 = vst.msk [vmem:[#allocation3 + $0x18] sm:$0xff] %vm974_vm5, %v981_v14  ;;  %v983_v17 = vsel %vm982_vm10, %v979_v15, %v981_v14 }
 0x71e   : > { %v1444_v21 = vpack.c.bf16 %v983_v17, %v971_v10 }
 0x71f   : > { %v989_v22 = vpop.permute.xlu0 %988 }
 0x720   : > { %v991_v16 = vpop.permute.xlu1 %990 }
 0x721   : > { %997 = vst.msk [vmem:[#allocation3 + $0x28] sm:$0xff] %vm974_vm5, %v991_v16  ;;  %v993_v25 = vsel %vm992_vm12, %v989_v22, %v991_v16 }
 0x724   : > { %v1001_v19 = vld [vmem:[#allocation3 + $0x18] sm:$0xff] }
 0x725   : > { %v1442_v20 = vpack.c.bf16 %v1001_v19, %v999_v18 }
 0x727   : > { %1443 = vmatprep.subr.bf16.mxu0 %v1442_v20 }
 0x728   : > { %1445 = vmatpush1.bf16.msra.mxu0 %v1444_v21  ;;  %v1003_v23 = vld [vmem:[#allocation3 + $0x28] sm:$0xff] }
 0x729   : > { %1020 = vmatprep.subr.mxu0 %v1003_v23 }
 0x72c   : > { %1021 = vmatpush1.msra.mxu0 %v993_v25 }
 0x72d   : > { %1404 = vmatmul.mubr.msk.f32.vlgmr.msra.gmra.mrb[4].mxu0 %vm439_vm8, %v1402_v24 }
 0x730   : > { %v1011_v31 = vpop.permute.xlu0 %1010 }
 0x800   : > { %v1082_v32 = vpop.f32.mrb[4].mxu0 }
 0x801   : > { %v1083_v33 = vadd.f32 %v1082_v32, %v1011_v31  ;;  %v1084_v36 = vpop.f32.mrb[5].mxu0 }
 0x802   : > { %v1085_v37 = vadd.f32 %v1084_v36, %v1011_v31 }
 0x803   : > { %v1103_v28 = vsel %vm1091_vm14, %v1083_v33, 0.0 }
 0x804   : > { %v1107_v29 = vmul.f32 0.2, %v1103_v28  ;;  %v1104_v38 = vsel %vm1096_vm15, %v1085_v37, 0.0  ;;  %vm1105_vm3 = vcmp.gt.f32.partialorder %v1103_v28, 0.0 }
 0x805   : > { %v1108_v39 = vmul.f32 0.2, %v1104_v38  ;;  %vm1106_vm4 = vcmp.gt.f32.partialorder %v1104_v38, 0.0 }
 0x806   : > { %v1109_v40 = vsel %vm1105_vm3, %v1103_v28, %v1107_v29 }
 0x807   : > { %1114 = vrot.lane.b32.xlu1 %v1109_v40, %s1859_s27  ;;  %v1110_v34 = vsel %vm1106_vm4, %v1104_v38, %v1108_v39 }
 0x808   : > { %1116 = vrot.lane.b32.xlu0 %v1110_v34, %s1859_s27 }
 0x80b   : > { %1121 = vrot.lane.b32.xlu1 %v1109_v40, %s1861_s3 }
 0x80c   : > { %1123 = vrot.lane.b32.xlu0 %v1110_v34, %s1861_s3 }
 0x80f   : > { %1137 = vperm.xlu1 %1597, %v1406_v35  }
 0x810   : > { %1215 = vrot.lane.b32.xlu0 %v2377_v5, %s1864_s28 }
 0x813   : > { %1217 = vrot.lane.b32.xlu1 %v2379_v7, %s1864_s28  ;;  %s1409_s28 = sshll.u32 %s2579_s24, 1  ;;  %s1870_s24 = smov [#allocation10]  }
 0x814   : > { %s1235_s4 = sadd.s32 %s2572_s7, %s1409_s28  ;;  %s1695_s7 = scalar_lea.vmem %s2431_s12, 128 }
 0x815   : > { %s1410_s9 = sshll.u32 %s1235_s4, 7  ;;  %p1696_p13 = scmp.ne.s32.totalorder %s2431_s12, %s1695_s7 }
 0x816   : > { %s2429_s5 = scalar_lea.hbm %s2580_s14, %s1410_s9  ;;  %s1699_s27 = sshll.u32 %s1870_s24, 4  ;;  %s1700_s27 = int_to_ptr.vmem [resolvable:$false] %s1699_s27 }
 0x817   : > { %p1697_p1 = pnand %p1696_p13, %p2581_p12  ;;  %s1701_s3 = scalar_lea.vmem %s1700_s27, 256 }
 0x818   : > { %p1702_p0 = scmp.lt.s32.totalorder %s2431_s12, %s1700_s27  ;;  %p1703_p7 = scmp.lt.s32.totalorder %s1701_s3, %s1695_s7 }
 0x819   : > { %p1698_p2 = pneg %p1697_p1 }
 0x81a   : > { %p1704_p8 = por %p1703_p7, %p1702_p0 }
 0x81c   : > { %p1705_p3 = pnand %p1704_p8, %p1698_p2 }
 0x879   : > { %v1115_v41 = vpop.permute.xlu1 %1114 }
 0x87a   : > { %v1117_v42 = vpop.permute.xlu0 %1116 }
 0x87b   : > { %v1118_v43 = vsel %vm410_vm6, %v1115_v41, %v1117_v42 }
 0x87c   : > { %v1447_v44 = vpack.c.bf16 %v1118_v43, %v1109_v40 }
 0x87d   : > { %v1122_v45 = vpop.permute.xlu1 %1121 }
 0x87e   : > { %v1124_v46 = vpop.permute.xlu0 %1123  ;;  %1448 = vmatpush3.bf16.msra.mxu1 %v1447_v44 }
 0x87f   : > { %v1125_v47 = vsel %vm420_vm7, %v1122_v45, %v1124_v46  ;;  %1421 = vmatprep.subr.mxu1 %v1860_v12 }
 0x882   : > { %1422 = vmatpush3.msra.mxu1 %v1125_v47  ;;  %v1216_v52 = vpop.permute.xlu0 %1215 }
 0x883   : > { %1424 = vmatmul.mubr.msk.f32.vlgmr.msra.gmra.mrb[4].mxu1 %vm439_vm8, %v1405_v48 }
 0x88e   : > { %v1138_v49 = vpop.permute.xlu1 %1137 }
 0x892   : > { %v1218_v50 = vpop.permute.xlu1 %1217 }
 0x893   : > { %v1219_v54 = vsel %vm707_vm1, %v1216_v52, %v1218_v50 }
 0x956   : > { %v1209_v51 = vpop.f32.mrb[4].mxu1 }
 0x957   : > { %v1210_v53 = vadd.f32 %v1209_v51, %v1138_v49  ;;  %v1425_v12 = vpop.f32.mrb[5].mxu1 }
 0x959   : > { %v1221_v55 = vadd.f32 %v1219_v54, %v1210_v53 }
 0x95b   : > { %1222 = vst [vmem:[%s354_s29] sm:$0xff] %v1221_v55 }
 0x95c   : > { %1708 = shalt.err (!%p1705_p3)
}
 0x95d   : > { %s1709_s21 = scalar_lea.hbm %s2429_s5, 128  ;;  %s1713_s9 = scalar_lea.hbm %s2580_s14, 512 }
 0x95e   : > { %p1710_p11 = scmp.ne.s32.totalorder %s2429_s5, %s1709_s21  ;;  %p1714_p6 = scmp.lt.u32.totalorder %s2429_s5, %s2580_s14 }
 0x95f   : > { %p1715_p9 = scmp.lt.u32.totalorder %s1713_s9, %s1709_s21  ;;  %p1717_p13 = scmp.lt.u32.totalorder %s1709_s21, %s2429_s5 }
 0x960   : > { %p1711_p4 = pnand %p1710_p11, %p2581_p12 }
 0x961   : > { %p1716_p5 = por %p1715_p9, %p1714_p6 }
 0x962   : > { %p1712_p10 = pneg %p1711_p4 }
 0x963   : > { %p1718_p1 = por %p1717_p13, %p1716_p5 }
 0x965   : > { %p1719_p2 = pnand %p1718_p1, %p1712_p10 }
 0x967   : > { %1722 = shalt.err (!%p1719_p2)
}
 0x968   : > { %1455 = dma.vmem_to_hbm [thread:$0]  (%p2581_p12), %s2431_s12, 128, %s2429_s5, %s1224_s16  }
 0x969 PF: > { %s2582_s18 = sld [smem:[#allocation15_spill]]  ;;  %s2583_s7 = sld [smem:[#allocation21_spill]] }
 0x96a   : > { %p1472_p0 = scmp.ge.s32.totalorder %s1853_s6, 2 }
 0x96f   : > { %s1251_s24 = sand.u32 1, %s2582_s18   ;;  %p2584_p7 = scmp.ne.s32.totalorder %s2583_s7, 0 }
 0x970   : > { %s1252_s27 = scalar_lea.sflag [#allocation6], %s1251_s24 }
 0x971   : > { %p1468_p8 = pnand %p1472_p0, %p2584_p7 }
 0x973   : > { %1792 = dma.done.wait (!%p1468_p8), %s1252_s27, 128  }
 0x974   : > { %1794 = vsyncadd (!%p1468_p8), %s1252_s27, 4294967168  ;;  %s24_s6 = sadd.s32 1, %s1853_s6   ;;  %s2586_s27 = sld [smem:[#allocation18_spill]] }
 0x975   : > { %p2461_p3 = scmp.ge.s32.totalorder %s24_s6, 6   ;;  %s2587_s29 = sld [smem:[#allocation19_spill]] }
 0x976   : > { %s2588_s15 = sld [smem:[#allocation22_spill]]  ;;  %s2589_s18 = smov %s1805_s19 }
 0x977   : > { %s2590_s19 = smov %s1809_s20  ;;  %s2591_s20 = smov %s2171_s13 }
 0x978   : > { %s2592_s21 = smov %s1817_s22  ;;  %s2593_s22 = smov %s1821_s23 }
 0x979   : > { %s2594_s23 = smov %s2109_s17  ;;  %s2595_s24 = smov %s1829_s25 }
 0x97a   : > { %s2596_s25 = smov %s1833_s26  ;;  %s2597_s26 = smov %s2104_s11 }
 0x97b   : > { %s2598_s28 = smov %s1849_s30  ;;  %23 = sbr.rel (!%p2461_p3) target bundleno = 17 (0x11), region = 119 }
 0x97c   : > { %s2599_s30 = smov %s2588_s15 }
 0x982   :  { %1257 = vsyncpa [#allocation5], 1 }
 0x983   :  { %1259 = vsyncpa [#allocation5 + $0x1], 1 }
 0x984   :  { %1260 = vsyncpa [#allocation8], 1 }
 0x985   :  { %1262 = vsyncpa [#allocation8 + $0x1], 1 }
 0x986   :  { %1263 = vsyncpa [#allocation6], 1 }
 0x987   :  { %1265 = vsyncpa [#allocation6 + $0x1], 1 }

</bundles_post_ra>
